<compile_context>
chip_gen: v5e
topology: v5e:2x2
jax: 0.10.0
libtpu: 0.0.40
codegen_flags: <defaults>
</compile_context>

<pallas_src>
import functools
import math

import jax
import jax.numpy as jnp
from jax.experimental import pallas as pl
from jax.experimental.pallas import tpu as pltpu


def _elu_plus_one(x):
    # F.elu(x) + 1; exp() only sees min(x, 0) so the unselected branch never produces inf.
    return jnp.where(x > 0, x + 1.0, jnp.exp(jnp.minimum(x, 0.0)))


def linear_attention_kernel(x_ref, wq_ref, bq_ref, wkv_ref, bkv_ref, wo_ref, bo_ref,
                            o_ref, kv_acc, ksum_acc,
                            *, num_heads, head_dim, approx_recip):
    """Two-phase linear attention over S-chunks.

    grid = (batch_blocks, phase, s_chunks):
      phase 0: project K/V for this chunk, accumulate per-head KV = K^T V and
               ksum = sum_s K into f32 VMEM scratch.
      phase 1: project Q for this chunk, out = (Q KV) / (Q . ksum + 1e-6), out_proj.
    """
    H, Dh = num_heads, head_dim
    E = H * Dh
    Bb, TS, _ = x_ref.shape
    phase = pl.program_id(1)
    chunk = pl.program_id(2)

    # Flatten (Bb, TS) so the projection matmuls see Bb*TS MXU rows.
    x = x_ref[...].reshape(Bb * TS, E)
    cdt = x.dtype                              # MXU operand dtype (bf16 or f32)

    # ---------------- phase 0: accumulate per-head KV and K-sum ----------------
    @pl.when(phase == 0)
    def _accumulate():
        @pl.when(chunk == 0)
        def _init():
            kv_acc[...] = jnp.zeros_like(kv_acc)
            ksum_acc[...] = jnp.zeros_like(ksum_acc)

        # Fused K|V projection: one (Bb*TS, E) x (E, 2E) MXU matmul, f32 accumulation.
        kv_p = jnp.dot(x, wkv_ref[...], preferred_element_type=jnp.float32)
        kv_p = kv_p + bkv_ref[...]
        kf = _elu_plus_one(kv_p[:, :E])        # (Bb*TS, E) f32
        v = kv_p[:, E:]                        # (Bb*TS, E) f32

        # Head-batched KV formation, statically unrolled over H (no block-diagonal
        # mask matmul -> no H x wasted MXU FLOPs; slices are lane-aligned for Dh%128==0).
        for h in range(H):
            cols = slice(h * Dh, (h + 1) * Dh)
            kf_h = kf[:, cols].reshape(Bb, TS, Dh)
            v_h = v[:, cols].reshape(Bb, TS, Dh)
            kv_acc[h] += jnp.einsum(
                "btd,bte->bde", kf_h.astype(cdt), v_h.astype(cdt),
                preferred_element_type=jnp.float32)                 # (Bb, Dh, Dh)
            # K-sum accumulator replaces the old denominator matmul ("ones-column"
            # trick without padding Dh -> Dh+1 lanes).  Kept in f32; note the
            # numerator path uses bf16-cast operands on the bf16 path (documented
            # small numerator/denominator precision mismatch, within tolerance).
            ksum_acc[h] += jnp.sum(kf_h, axis=1, keepdims=True)     # (Bb, 1, Dh)

    # ---------------- phase 1: per-chunk outputs from the full KV ----------------
    @pl.when(phase == 1)
    def _produce():
        q = jnp.dot(x, wq_ref[...], preferred_element_type=jnp.float32) + bq_ref[...]
        qf = _elu_plus_one(q)                                        # (Bb*TS, E) f32

        heads = []
        for h in range(H):
            cols = slice(h * Dh, (h + 1) * Dh)
            qf_h = qf[:, cols].reshape(Bb, TS, Dh)
            num_h = jnp.einsum(
                "btd,bde->bte", qf_h.astype(cdt), kv_acc[h].astype(cdt),
                preferred_element_type=jnp.float32)                  # (Bb, TS, Dh)
            # Denominator = Q . ksum: VPU multiply + lane reduction, no MXU matmul.
            denom_h = jnp.sum(qf_h * ksum_acc[h], axis=-1, keepdims=True) + 1e-6
            z_h = pl.reciprocal(denom_h, approx=approx_recip)        # (Bb, TS, 1)
            heads.append((num_h * z_h).reshape(Bb * TS, Dh))
        attn = jnp.concatenate(heads, axis=-1)                       # (Bb*TS, E) f32

        out = jnp.dot(attn.astype(cdt), wo_ref[...],
                      preferred_element_type=jnp.float32) + bo_ref[...]
        o_ref[...] = out.reshape(Bb, TS, E).astype(o_ref.dtype)


def _largest_divisor_leq(n, cap):
    cap = max(1, min(n, cap))
    for d in range(cap, 0, -1):
        if n % d == 0:
            return d
    return 1


def scalable_attention_forward(x, params, num_heads, *,
                               compute_dtype=jnp.bfloat16, out_dtype=None,
                               seq_block=256, row_target=512):
    """ScalableAttention(attention_type="linear") forward (eval mode, no mask).

    Returns the output features only (LinearAttention returns attention_weights=None).
    """
    B, S, E = x.shape
    H = num_heads
    Dh = E // H
    out_dtype = compute_dtype if out_dtype is None else out_dtype

    # ---- tile-size selection --------------------------------------------------
    TS = _largest_divisor_leq(S, seq_block)          # S-chunk (bounds VMEM on v7x)
    bb_cap = max(1, row_target // TS)                # fill MXU rows
    if B > 1 and TS >= 128:
        bb_cap = min(bb_cap, max(1, B // 2))         # keep >=2 batch blocks for megacore
    Bb = _largest_divisor_leq(B, bb_cap)
    nb, nc = B // Bb, S // TS

    # ---- host-side parameter prep ----------------------------------------------
    wq = params["wq"].astype(compute_dtype)
    wkv = jnp.concatenate([params["wk"], params["wv"]], axis=1).astype(compute_dtype)
    wo = params["wo"].astype(compute_dtype)
    bq = params["bq"].astype(jnp.float32)
    bkv = jnp.concatenate([params["bk"], params["bv"]], axis=1).astype(jnp.float32)
    bo = params["bo"].astype(jnp.float32)
    xc = x.astype(compute_dtype)

    approx_recip = compute_dtype != jnp.float32
    kernel = functools.partial(linear_attention_kernel,
                               num_heads=H, head_dim=Dh, approx_recip=approx_recip)

    # ---- specs ------------------------------------------------------------------
    x_spec = pl.BlockSpec((Bb, TS, E), lambda b, p, c: (b, c, 0))
    # Phase 0 parks the (unwritten) output block at chunk 0 so no garbage block is
    # ever written back; phase 1 sweeps chunks 0..nc-1 with the real outputs.
    o_spec = pl.BlockSpec((Bb, TS, E), lambda b, p, c: (b, p * c, 0))
    const = lambda b, p, c: (0, 0)                   # resident weights: DMA'd once

    # ---- explicit VMEM budget (scoped default is only 16/32 MiB on v5e / v6e+v7x) --
    cb = jnp.dtype(compute_dtype).itemsize
    ob = jnp.dtype(out_dtype).itemsize
    weights_bytes = 4 * E * E * cb + 4 * E * 4
    block_bytes = Bb * TS * E * (cb + ob)
    scratch_bytes = H * Bb * (max(Dh, 8) + 8) * max(Dh, 128) * 4
    est = 2 * (weights_bytes + block_bytes) + scratch_bytes
    vmem_limit = int(min(max(2 * est, 8 << 20), 64 << 20))

    return pl.pallas_call(
        kernel,
        out_shape=jax.ShapeDtypeStruct((B, S, E), out_dtype),
        grid=(nb, 2, nc),
        in_specs=[x_spec,
                  pl.BlockSpec((E, E), const),        # W_q
                  pl.BlockSpec((1, E), const),        # b_q
                  pl.BlockSpec((E, 2 * E), const),    # W_k | W_v fused
                  pl.BlockSpec((1, 2 * E), const),    # b_k | b_v fused
                  pl.BlockSpec((E, E), const),        # W_out
                  pl.BlockSpec((1, E), const)],       # b_out
        out_specs=o_spec,
        scratch_shapes=[pltpu.VMEM((H, Bb, Dh, Dh), jnp.float32),   # per-head KV acc
                        pltpu.VMEM((H, Bb, 1, Dh), jnp.float32)],   # per-head K-sum acc
        compiler_params=pltpu.CompilerParams(
            dimension_semantics=("parallel", "arbitrary", "arbitrary"),
            vmem_limit_bytes=vmem_limit),
    )(xc, wq, bq, wkv, bkv, wo, bo)


# ---------------- pure-JAX reference (mirrors the PyTorch math, f32) ----------------
def reference_forward(x, params, num_heads):
    B, S, E = x.shape
    Dh = E // num_heads
    q = x @ params["wq"] + params["bq"][0]
    k = x @ params["wk"] + params["bk"][0]
    v = x @ params["wv"] + params["bv"][0]
    qf = _elu_plus_one(q).reshape(B, S, num_heads, Dh).transpose(0, 2, 1, 3)
    kf = _elu_plus_one(k).reshape(B, S, num_heads, Dh).transpose(0, 2, 1, 3)
    vv = v.reshape(B, S, num_heads, Dh).transpose(0, 2, 1, 3)
    kv = jnp.einsum("bhsd,bhse->bhde", kf, vv)
    z = 1.0 / (jnp.einsum("bhsd,bhd->bhs", qf, kf.sum(axis=2)) + 1e-6)
    out = jnp.einsum("bhsd,bhde,bhs->bhse", qf, kv, z)
    out = out.transpose(0, 2, 1, 3).reshape(B, S, E)
    return out @ params["wo"] + params["bo"][0]


def init_params(key, embed_dim):
    ks = jax.random.split(key, 8)
    limit = math.sqrt(6.0 / (embed_dim + embed_dim))    # xavier_uniform
    blim = 1.0 / math.sqrt(embed_dim)                   # default nn.Linear bias init
    def w(k):
        return jax.random.uniform(k, (embed_dim, embed_dim), jnp.float32, -limit, limit)
    def b(k):
        return jax.random.uniform(k, (1, embed_dim), jnp.float32, -blim, blim)
    return {
        "wq": w(ks[0]), "bq": b(ks[1]),
        "wk": w(ks[2]), "bk": b(ks[3]),
        "wv": w(ks[4]), "bv": b(ks[5]),
        "wo": w(ks[6]), "bo": b(ks[7]),
    }


if __name__ == "__main__":
    B, S, E, H = 2, 8, 32, 4   # batch, num_agents (seq), embed_dim, num_heads

    key = jax.random.PRNGKey(0)
    kx, kp = jax.random.split(key)
    x = jax.random.normal(kx, (B, S, E), dtype=jnp.float32)
    params = init_params(kp, E)

    ref = reference_forward(x, params, H)

    # f32 compute path: tight parity check against the PyTorch-style math.
    out_f32 = scalable_attention_forward(x, params, H,
                                         compute_dtype=jnp.float32,
                                         out_dtype=jnp.float32)
    out_f32 = jax.block_until_ready(out_f32)
    assert out_f32.shape == (B, S, E)
    assert jnp.allclose(out_f32, ref, rtol=1e-3, atol=1e-3), \
        "Pallas f32 output mismatch vs reference"

    # bf16 MXU path (v6e/v7x recommendation): f32 accumulation, approx reciprocal,
    # bf16 output writeback.
    out_bf16 = scalable_attention_forward(x, params, H, compute_dtype=jnp.bfloat16)
    out_bf16 = jax.block_until_ready(out_bf16)
    assert out_bf16.shape == (B, S, E)
    assert jnp.allclose(out_bf16.astype(jnp.float32), ref, rtol=5e-2, atol=5e-2), \
        "Pallas bf16 output mismatch vs reference"

    print("KERNEL_OK")
</pallas_src>

<mosaic_0001>
module attributes {stable_mosaic.version = 11 : i64} {
  func.func @linear_attention_kernel(%arg0: i32, %arg1: i32, %arg2: i32, %arg3: memref<2x8x32xf32, #tpu.memory_space<vmem>>, %arg4: memref<32x32xf32, #tpu.memory_space<vmem>>, %arg5: memref<1x32xf32, #tpu.memory_space<vmem>>, %arg6: memref<32x64xf32, #tpu.memory_space<vmem>>, %arg7: memref<1x64xf32, #tpu.memory_space<vmem>>, %arg8: memref<32x32xf32, #tpu.memory_space<vmem>>, %arg9: memref<1x32xf32, #tpu.memory_space<vmem>>, %arg10: memref<2x8x32xf32, #tpu.memory_space<vmem>>, %arg11: memref<4x2x8x8xf32, #tpu.memory_space<vmem>>, %arg12: memref<4x2x1x8xf32, #tpu.memory_space<vmem>>) attributes {dimension_semantics = [#tpu.dimension_semantics<parallel>, #tpu.dimension_semantics<arbitrary>, #tpu.dimension_semantics<arbitrary>], iteration_bounds = array<i64: 1, 2, 1>, scalar_prefetch = 0 : i64, scratch_operands = 2 : i64, tpu.core_type = #tpu.core_type<tc>, window_params = [{transform_indices = @transform_0, window_bounds = array<i64: 2, 8, 32>}, {pipeline_mode = #tpu.pipeline_mode<synchronous>, transform_indices = @transform_1, window_bounds = array<i64: 32, 32>}, {pipeline_mode = #tpu.pipeline_mode<synchronous>, transform_indices = @transform_2, window_bounds = array<i64: 1, 32>}, {pipeline_mode = #tpu.pipeline_mode<synchronous>, transform_indices = @transform_3, window_bounds = array<i64: 32, 64>}, {pipeline_mode = #tpu.pipeline_mode<synchronous>, transform_indices = @transform_4, window_bounds = array<i64: 1, 64>}, {pipeline_mode = #tpu.pipeline_mode<synchronous>, transform_indices = @transform_5, window_bounds = array<i64: 32, 32>}, {pipeline_mode = #tpu.pipeline_mode<synchronous>, transform_indices = @transform_6, window_bounds = array<i64: 1, 32>}, {transform_indices = @transform_7, window_bounds = array<i64: 2, 8, 32>}]} {
    %c0 = arith.constant 0 : index
    %c0_0 = arith.constant 0 : index
    %c0_1 = arith.constant 0 : index
    %0 = vector.load %arg3[%c0, %c0_0, %c0_1] : memref<2x8x32xf32, #tpu.memory_space<vmem>>, vector<2x8x32xf32>
    %1 = vector.shape_cast %0 : vector<2x8x32xf32> to vector<16x32xf32>
    %c0_i32 = arith.constant 0 : i32
    %2 = arith.cmpi eq, %arg1, %c0_i32 : i32
    %3 = arith.extui %2 : i1 to i32
    %c0_i32_2 = arith.constant 0 : i32
    %4 = arith.cmpi ne, %3, %c0_i32_2 : i32
    scf.if %4 {
      %c0_i32_4 = arith.constant 0 : i32
      %8 = arith.cmpi eq, %arg2, %c0_i32_4 : i32
      %9 = arith.extui %8 : i1 to i32
      %c0_i32_5 = arith.constant 0 : i32
      %10 = arith.cmpi ne, %9, %c0_i32_5 : i32
      scf.if %10 {
        %cst_82 = arith.constant 0.000000e+00 : f32
        %102 = vector.broadcast %cst_82 : f32 to vector<4x2x8x8xf32>
        %c0_83 = arith.constant 0 : index
        %c0_84 = arith.constant 0 : index
        %c0_85 = arith.constant 0 : index
        %c0_86 = arith.constant 0 : index
        %103 = vector.load %arg11[%c0_83, %c0_84, %c0_85, %c0_86] : memref<4x2x8x8xf32, #tpu.memory_space<vmem>>, vector<4x2x8x8xf32>
        tpu.vector_store %arg11[%c0_83, %c0_84, %c0_85, %c0_86], %102 {strides = array<i32>} : memref<4x2x8x8xf32, #tpu.memory_space<vmem>>, vector<4x2x8x8xf32>,
        %cst_87 = arith.constant 0.000000e+00 : f32
        %104 = vector.broadcast %cst_87 : f32 to vector<4x2x1x8xf32>
        %c0_88 = arith.constant 0 : index
        %c0_89 = arith.constant 0 : index
        %c0_90 = arith.constant 0 : index
        %c0_91 = arith.constant 0 : index
        %105 = vector.load %arg12[%c0_88, %c0_89, %c0_90, %c0_91] : memref<4x2x1x8xf32, #tpu.memory_space<vmem>>, vector<4x2x1x8xf32>
        tpu.vector_store %arg12[%c0_88, %c0_89, %c0_90, %c0_91], %104 {strides = array<i32>} : memref<4x2x1x8xf32, #tpu.memory_space<vmem>>, vector<4x2x1x8xf32>,
      } else {
      }
      %c0_6 = arith.constant 0 : index
      %c0_7 = arith.constant 0 : index
      %11 = vector.load %arg6[%c0_6, %c0_7] : memref<32x64xf32, #tpu.memory_space<vmem>>, vector<32x64xf32>
      %cst = arith.constant dense<0.000000e+00> : vector<16x64xf32>
      %12 = tpu.matmul %1, %11, %cst {dimension_numbers = #tpu.dot_dimension_numbers<[1], [0], [0], [1], [0, 0, 1, 1], [], []>} : vector<16x32xf32>, vector<32x64xf32>, vector<16x64xf32> -> vector<16x64xf32>
      %c0_8 = arith.constant 0 : index
      %c0_9 = arith.constant 0 : index
      %13 = vector.load %arg7[%c0_8, %c0_9] : memref<1x64xf32, #tpu.memory_space<vmem>>, vector<1x64xf32>
      %14 = vector.broadcast %13 : vector<1x64xf32> to vector<16x64xf32>
      %15 = arith.addf %12, %14 : vector<16x64xf32>
      %16 = vector.extract_strided_slice %15 {offsets = [0, 0], sizes = [16, 32], strides = [1, 1]} : vector<16x64xf32> to vector<16x32xf32>
      %cst_10 = arith.constant 0.000000e+00 : f32
      %17 = vector.broadcast %cst_10 : f32 to vector<16x32xf32>
      %18 = arith.cmpf ogt, %16, %17 : vector<16x32xf32>
      %cst_11 = arith.constant 1.000000e+00 : f32
      %19 = vector.broadcast %cst_11 : f32 to vector<16x32xf32>
      %20 = arith.addf %16, %19 : vector<16x32xf32>
      %cst_12 = arith.constant 0.000000e+00 : f32
      %21 = vector.broadcast %cst_12 : f32 to vector<16x32xf32>
      %22 = arith.minimumf %16, %21 : vector<16x32xf32>
      %23 = math.exp %22 : vector<16x32xf32>
      %24 = arith.select %18, %20, %23 : vector<16x32xi1>, vector<16x32xf32>
      %25 = vector.extract_strided_slice %15 {offsets = [0, 32], sizes = [16, 32], strides = [1, 1]} : vector<16x64xf32> to vector<16x32xf32>
      %26 = vector.extract_strided_slice %24 {offsets = [0, 0], sizes = [16, 8], strides = [1, 1]} : vector<16x32xf32> to vector<16x8xf32>
      %27 = vector.shape_cast %26 : vector<16x8xf32> to vector<2x8x8xf32>
      %28 = vector.extract_strided_slice %25 {offsets = [0, 0], sizes = [16, 8], strides = [1, 1]} : vector<16x32xf32> to vector<16x8xf32>
      %29 = vector.shape_cast %28 : vector<16x8xf32> to vector<2x8x8xf32>
      %c0_13 = arith.constant 0 : index
      %c0_14 = arith.constant 0 : index
      %c0_15 = arith.constant 0 : index
      %c0_16 = arith.constant 0 : index
      %30 = vector.load %arg11[%c0_13, %c0_14, %c0_15, %c0_16] : memref<4x2x8x8xf32, #tpu.memory_space<vmem>>, vector<1x2x8x8xf32>
      %31 = vector.shape_cast %30 : vector<1x2x8x8xf32> to vector<2x8x8xf32>
      "tpu.trace_start"() <{level = 10 : i32, message = "btd,bte->bde"}> : () -> ()
      %cst_17 = arith.constant dense<0.000000e+00> : vector<2x8x8xf32>
      %32 = tpu.matmul %27, %29, %cst_17 {dimension_numbers = #tpu.dot_dimension_numbers<[1], [1], [2], [2], [0, 0, 0, 2, 1, 2], [0], [0]>} : vector<2x8x8xf32>, vector<2x8x8xf32>, vector<2x8x8xf32> -> vector<2x8x8xf32>
      "tpu.trace_stop"() : () -> ()
      %33 = arith.addf %31, %32 : vector<2x8x8xf32>
      %c0_18 = arith.constant 0 : index
      %c0_19 = arith.constant 0 : index
      %c0_20 = arith.constant 0 : index
      %c0_21 = arith.constant 0 : index
      %34 = vector.load %arg11[%c0_18, %c0_19, %c0_20, %c0_21] : memref<4x2x8x8xf32, #tpu.memory_space<vmem>>, vector<1x2x8x8xf32>
      %35 = vector.shape_cast %34 : vector<1x2x8x8xf32> to vector<2x8x8xf32>
      %36 = vector.shape_cast %33 : vector<2x8x8xf32> to vector<1x2x8x8xf32>
      tpu.vector_store %arg11[%c0_18, %c0_19, %c0_20, %c0_21], %36 {strides = array<i32>} : memref<4x2x8x8xf32, #tpu.memory_space<vmem>>, vector<1x2x8x8xf32>,
      %c0_22 = arith.constant 0 : index
      %c0_23 = arith.constant 0 : index
      %c0_24 = arith.constant 0 : index
      %c0_25 = arith.constant 0 : index
      %37 = vector.load %arg12[%c0_22, %c0_23, %c0_24, %c0_25] : memref<4x2x1x8xf32, #tpu.memory_space<vmem>>, vector<1x2x1x8xf32>
      %38 = vector.shape_cast %37 : vector<1x2x1x8xf32> to vector<2x1x8xf32>
      %cst_26 = arith.constant dense<0.000000e+00> : vector<2x8xf32>
      %39 = vector.multi_reduction <add>, %27, %cst_26 [1] : vector<2x8x8xf32> to vector<2x8xf32>
      %40 = vector.shape_cast %39 : vector<2x8xf32> to vector<2x1x8xf32>
      %41 = arith.addf %38, %40 : vector<2x1x8xf32>
      %c0_27 = arith.constant 0 : index
      %c0_28 = arith.constant 0 : index
      %c0_29 = arith.constant 0 : index
      %c0_30 = arith.constant 0 : index
      %42 = vector.load %arg12[%c0_27, %c0_28, %c0_29, %c0_30] : memref<4x2x1x8xf32, #tpu.memory_space<vmem>>, vector<1x2x1x8xf32>
      %43 = vector.shape_cast %42 : vector<1x2x1x8xf32> to vector<2x1x8xf32>
      %44 = vector.shape_cast %41 : vector<2x1x8xf32> to vector<1x2x1x8xf32>
      tpu.vector_store %arg12[%c0_27, %c0_28, %c0_29, %c0_30], %44 {strides = array<i32>} : memref<4x2x1x8xf32, #tpu.memory_space<vmem>>, vector<1x2x1x8xf32>,
      %45 = vector.extract_strided_slice %24 {offsets = [0, 8], sizes = [16, 8], strides = [1, 1]} : vector<16x32xf32> to vector<16x8xf32>
      %46 = vector.shape_cast %45 : vector<16x8xf32> to vector<2x8x8xf32>
      %47 = vector.extract_strided_slice %25 {offsets = [0, 8], sizes = [16, 8], strides = [1, 1]} : vector<16x32xf32> to vector<16x8xf32>
      %48 = vector.shape_cast %47 : vector<16x8xf32> to vector<2x8x8xf32>
      %c1 = arith.constant 1 : index
      %c0_31 = arith.constant 0 : index
      %c0_32 = arith.constant 0 : index
      %c0_33 = arith.constant 0 : index
      %49 = vector.load %arg11[%c1, %c0_31, %c0_32, %c0_33] : memref<4x2x8x8xf32, #tpu.memory_space<vmem>>, vector<1x2x8x8xf32>
      %50 = vector.shape_cast %49 : vector<1x2x8x8xf32> to vector<2x8x8xf32>
      "tpu.trace_start"() <{level = 10 : i32, message = "btd,bte->bde"}> : () -> ()
      %cst_34 = arith.constant dense<0.000000e+00> : vector<2x8x8xf32>
      %51 = tpu.matmul %46, %48, %cst_34 {dimension_numbers = #tpu.dot_dimension_numbers<[1], [1], [2], [2], [0, 0, 0, 2, 1, 2], [0], [0]>} : vector<2x8x8xf32>, vector<2x8x8xf32>, vector<2x8x8xf32> -> vector<2x8x8xf32>
      "tpu.trace_stop"() : () -> ()
      %52 = arith.addf %50, %51 : vector<2x8x8xf32>
      %c1_35 = arith.constant 1 : index
      %c0_36 = arith.constant 0 : index
      %c0_37 = arith.constant 0 : index
      %c0_38 = arith.constant 0 : index
      %53 = vector.load %arg11[%c1_35, %c0_36, %c0_37, %c0_38] : memref<4x2x8x8xf32, #tpu.memory_space<vmem>>, vector<1x2x8x8xf32>
      %54 = vector.shape_cast %53 : vector<1x2x8x8xf32> to vector<2x8x8xf32>
      %55 = vector.shape_cast %52 : vector<2x8x8xf32> to vector<1x2x8x8xf32>
      tpu.vector_store %arg11[%c1_35, %c0_36, %c0_37, %c0_38], %55 {strides = array<i32>} : memref<4x2x8x8xf32, #tpu.memory_space<vmem>>, vector<1x2x8x8xf32>,
      %c1_39 = arith.constant 1 : index
      %c0_40 = arith.constant 0 : index
      %c0_41 = arith.constant 0 : index
      %c0_42 = arith.constant 0 : index
      %56 = vector.load %arg12[%c1_39, %c0_40, %c0_41, %c0_42] : memref<4x2x1x8xf32, #tpu.memory_space<vmem>>, vector<1x2x1x8xf32>
      %57 = vector.shape_cast %56 : vector<1x2x1x8xf32> to vector<2x1x8xf32>
      %cst_43 = arith.constant dense<0.000000e+00> : vector<2x8xf32>
      %58 = vector.multi_reduction <add>, %46, %cst_43 [1] : vector<2x8x8xf32> to vector<2x8xf32>
      %59 = vector.shape_cast %58 : vector<2x8xf32> to vector<2x1x8xf32>
      %60 = arith.addf %57, %59 : vector<2x1x8xf32>
      %c1_44 = arith.constant 1 : index
      %c0_45 = arith.constant 0 : index
      %c0_46 = arith.constant 0 : index
      %c0_47 = arith.constant 0 : index
      %61 = vector.load %arg12[%c1_44, %c0_45, %c0_46, %c0_47] : memref<4x2x1x8xf32, #tpu.memory_space<vmem>>, vector<1x2x1x8xf32>
      %62 = vector.shape_cast %61 : vector<1x2x1x8xf32> to vector<2x1x8xf32>
      %63 = vector.shape_cast %60 : vector<2x1x8xf32> to vector<1x2x1x8xf32>
      tpu.vector_store %arg12[%c1_44, %c0_45, %c0_46, %c0_47], %63 {strides = array<i32>} : memref<4x2x1x8xf32, #tpu.memory_space<vmem>>, vector<1x2x1x8xf32>,
      %64 = vector.extract_strided_slice %24 {offsets = [0, 16], sizes = [16, 8], strides = [1, 1]} : vector<16x32xf32> to vector<16x8xf32>
      %65 = vector.shape_cast %64 : vector<16x8xf32> to vector<2x8x8xf32>
      %66 = vector.extract_strided_slice %25 {offsets = [0, 16], sizes = [16, 8], strides = [1, 1]} : vector<16x32xf32> to vector<16x8xf32>
      %67 = vector.shape_cast %66 : vector<16x8xf32> to vector<2x8x8xf32>
      %c2 = arith.constant 2 : index
      %c0_48 = arith.constant 0 : index
      %c0_49 = arith.constant 0 : index
      %c0_50 = arith.constant 0 : index
      %68 = vector.load %arg11[%c2, %c0_48, %c0_49, %c0_50] : memref<4x2x8x8xf32, #tpu.memory_space<vmem>>, vector<1x2x8x8xf32>
      %69 = vector.shape_cast %68 : vector<1x2x8x8xf32> to vector<2x8x8xf32>
      "tpu.trace_start"() <{level = 10 : i32, message = "btd,bte->bde"}> : () -> ()
      %cst_51 = arith.constant dense<0.000000e+00> : vector<2x8x8xf32>
      %70 = tpu.matmul %65, %67, %cst_51 {dimension_numbers = #tpu.dot_dimension_numbers<[1], [1], [2], [2], [0, 0, 0, 2, 1, 2], [0], [0]>} : vector<2x8x8xf32>, vector<2x8x8xf32>, vector<2x8x8xf32> -> vector<2x8x8xf32>
      "tpu.trace_stop"() : () -> ()
      %71 = arith.addf %69, %70 : vector<2x8x8xf32>
      %c2_52 = arith.constant 2 : index
      %c0_53 = arith.constant 0 : index
      %c0_54 = arith.constant 0 : index
      %c0_55 = arith.constant 0 : index
      %72 = vector.load %arg11[%c2_52, %c0_53, %c0_54, %c0_55] : memref<4x2x8x8xf32, #tpu.memory_space<vmem>>, vector<1x2x8x8xf32>
      %73 = vector.shape_cast %72 : vector<1x2x8x8xf32> to vector<2x8x8xf32>
      %74 = vector.shape_cast %71 : vector<2x8x8xf32> to vector<1x2x8x8xf32>
      tpu.vector_store %arg11[%c2_52, %c0_53, %c0_54, %c0_55], %74 {strides = array<i32>} : memref<4x2x8x8xf32, #tpu.memory_space<vmem>>, vector<1x2x8x8xf32>,
      %c2_56 = arith.constant 2 : index
      %c0_57 = arith.constant 0 : index
      %c0_58 = arith.constant 0 : index
      %c0_59 = arith.constant 0 : index
      %75 = vector.load %arg12[%c2_56, %c0_57, %c0_58, %c0_59] : memref<4x2x1x8xf32, #tpu.memory_space<vmem>>, vector<1x2x1x8xf32>
      %76 = vector.shape_cast %75 : vector<1x2x1x8xf32> to vector<2x1x8xf32>
      %cst_60 = arith.constant dense<0.000000e+00> : vector<2x8xf32>
      %77 = vector.multi_reduction <add>, %65, %cst_60 [1] : vector<2x8x8xf32> to vector<2x8xf32>
      %78 = vector.shape_cast %77 : vector<2x8xf32> to vector<2x1x8xf32>
      %79 = arith.addf %76, %78 : vector<2x1x8xf32>
      %c2_61 = arith.constant 2 : index
      %c0_62 = arith.constant 0 : index
      %c0_63 = arith.constant 0 : index
      %c0_64 = arith.constant 0 : index
      %80 = vector.load %arg12[%c2_61, %c0_62, %c0_63, %c0_64] : memref<4x2x1x8xf32, #tpu.memory_space<vmem>>, vector<1x2x1x8xf32>
      %81 = vector.shape_cast %80 : vector<1x2x1x8xf32> to vector<2x1x8xf32>
      %82 = vector.shape_cast %79 : vector<2x1x8xf32> to vector<1x2x1x8xf32>
      tpu.vector_store %arg12[%c2_61, %c0_62, %c0_63, %c0_64], %82 {strides = array<i32>} : memref<4x2x1x8xf32, #tpu.memory_space<vmem>>, vector<1x2x1x8xf32>,
      %83 = vector.extract_strided_slice %24 {offsets = [0, 24], sizes = [16, 8], strides = [1, 1]} : vector<16x32xf32> to vector<16x8xf32>
      %84 = vector.shape_cast %83 : vector<16x8xf32> to vector<2x8x8xf32>
      %85 = vector.extract_strided_slice %25 {offsets = [0, 24], sizes = [16, 8], strides = [1, 1]} : vector<16x32xf32> to vector<16x8xf32>
      %86 = vector.shape_cast %85 : vector<16x8xf32> to vector<2x8x8xf32>
      %c3 = arith.constant 3 : index
      %c0_65 = arith.constant 0 : index
      %c0_66 = arith.constant 0 : index
      %c0_67 = arith.constant 0 : index
      %87 = vector.load %arg11[%c3, %c0_65, %c0_66, %c0_67] : memref<4x2x8x8xf32, #tpu.memory_space<vmem>>, vector<1x2x8x8xf32>
      %88 = vector.shape_cast %87 : vector<1x2x8x8xf32> to vector<2x8x8xf32>
      "tpu.trace_start"() <{level = 10 : i32, message = "btd,bte->bde"}> : () -> ()
      %cst_68 = arith.constant dense<0.000000e+00> : vector<2x8x8xf32>
      %89 = tpu.matmul %84, %86, %cst_68 {dimension_numbers = #tpu.dot_dimension_numbers<[1], [1], [2], [2], [0, 0, 0, 2, 1, 2], [0], [0]>} : vector<2x8x8xf32>, vector<2x8x8xf32>, vector<2x8x8xf32> -> vector<2x8x8xf32>
      "tpu.trace_stop"() : () -> ()
      %90 = arith.addf %88, %89 : vector<2x8x8xf32>
      %c3_69 = arith.constant 3 : index
      %c0_70 = arith.constant 0 : index
      %c0_71 = arith.constant 0 : index
      %c0_72 = arith.constant 0 : index
      %91 = vector.load %arg11[%c3_69, %c0_70, %c0_71, %c0_72] : memref<4x2x8x8xf32, #tpu.memory_space<vmem>>, vector<1x2x8x8xf32>
      %92 = vector.shape_cast %91 : vector<1x2x8x8xf32> to vector<2x8x8xf32>
      %93 = vector.shape_cast %90 : vector<2x8x8xf32> to vector<1x2x8x8xf32>
      tpu.vector_store %arg11[%c3_69, %c0_70, %c0_71, %c0_72], %93 {strides = array<i32>} : memref<4x2x8x8xf32, #tpu.memory_space<vmem>>, vector<1x2x8x8xf32>,
      %c3_73 = arith.constant 3 : index
      %c0_74 = arith.constant 0 : index
      %c0_75 = arith.constant 0 : index
      %c0_76 = arith.constant 0 : index
      %94 = vector.load %arg12[%c3_73, %c0_74, %c0_75, %c0_76] : memref<4x2x1x8xf32, #tpu.memory_space<vmem>>, vector<1x2x1x8xf32>
      %95 = vector.shape_cast %94 : vector<1x2x1x8xf32> to vector<2x1x8xf32>
      %cst_77 = arith.constant dense<0.000000e+00> : vector<2x8xf32>
      %96 = vector.multi_reduction <add>, %84, %cst_77 [1] : vector<2x8x8xf32> to vector<2x8xf32>
      %97 = vector.shape_cast %96 : vector<2x8xf32> to vector<2x1x8xf32>
      %98 = arith.addf %95, %97 : vector<2x1x8xf32>
      %c3_78 = arith.constant 3 : index
      %c0_79 = arith.constant 0 : index
      %c0_80 = arith.constant 0 : index
      %c0_81 = arith.constant 0 : index
      %99 = vector.load %arg12[%c3_78, %c0_79, %c0_80, %c0_81] : memref<4x2x1x8xf32, #tpu.memory_space<vmem>>, vector<1x2x1x8xf32>
      %100 = vector.shape_cast %99 : vector<1x2x1x8xf32> to vector<2x1x8xf32>
      %101 = vector.shape_cast %98 : vector<2x1x8xf32> to vector<1x2x1x8xf32>
      tpu.vector_store %arg12[%c3_78, %c0_79, %c0_80, %c0_81], %101 {strides = array<i32>} : memref<4x2x1x8xf32, #tpu.memory_space<vmem>>, vector<1x2x1x8xf32>,
    } else {
    }
    %c1_i32 = arith.constant 1 : i32
    %5 = arith.cmpi eq, %arg1, %c1_i32 : i32
    %6 = arith.extui %5 : i1 to i32
    %c0_i32_3 = arith.constant 0 : i32
    %7 = arith.cmpi ne, %6, %c0_i32_3 : i32
    scf.if %7 {
      %c0_4 = arith.constant 0 : index
      %c0_5 = arith.constant 0 : index
      %8 = vector.load %arg4[%c0_4, %c0_5] : memref<32x32xf32, #tpu.memory_space<vmem>>, vector<32x32xf32>
      %cst = arith.constant dense<0.000000e+00> : vector<16x32xf32>
      %9 = tpu.matmul %1, %8, %cst {dimension_numbers = #tpu.dot_dimension_numbers<[1], [0], [0], [1], [0, 0, 1, 1], [], []>} : vector<16x32xf32>, vector<32x32xf32>, vector<16x32xf32> -> vector<16x32xf32>
      %c0_6 = arith.constant 0 : index
      %c0_7 = arith.constant 0 : index
      %10 = vector.load %arg5[%c0_6, %c0_7] : memref<1x32xf32, #tpu.memory_space<vmem>>, vector<1x32xf32>
      %11 = vector.broadcast %10 : vector<1x32xf32> to vector<16x32xf32>
      %12 = arith.addf %9, %11 : vector<16x32xf32>
      %cst_8 = arith.constant 0.000000e+00 : f32
      %13 = vector.broadcast %cst_8 : f32 to vector<16x32xf32>
      %14 = arith.cmpf ogt, %12, %13 : vector<16x32xf32>
      %cst_9 = arith.constant 1.000000e+00 : f32
      %15 = vector.broadcast %cst_9 : f32 to vector<16x32xf32>
      %16 = arith.addf %12, %15 : vector<16x32xf32>
      %cst_10 = arith.constant 0.000000e+00 : f32
      %17 = vector.broadcast %cst_10 : f32 to vector<16x32xf32>
      %18 = arith.minimumf %12, %17 : vector<16x32xf32>
      %19 = math.exp %18 : vector<16x32xf32>
      %20 = arith.select %14, %16, %19 : vector<16x32xi1>, vector<16x32xf32>
      %21 = vector.extract_strided_slice %20 {offsets = [0, 0], sizes = [16, 8], strides = [1, 1]} : vector<16x32xf32> to vector<16x8xf32>
      %22 = vector.shape_cast %21 : vector<16x8xf32> to vector<2x8x8xf32>
      %c0_11 = arith.constant 0 : index
      %c0_12 = arith.constant 0 : index
      %c0_13 = arith.constant 0 : index
      %c0_14 = arith.constant 0 : index
      %23 = vector.load %arg11[%c0_11, %c0_12, %c0_13, %c0_14] : memref<4x2x8x8xf32, #tpu.memory_space<vmem>>, vector<1x2x8x8xf32>
      %24 = vector.shape_cast %23 : vector<1x2x8x8xf32> to vector<2x8x8xf32>
      "tpu.trace_start"() <{level = 10 : i32, message = "btd,bde->bte"}> : () -> ()
      %cst_15 = arith.constant dense<0.000000e+00> : vector<2x8x8xf32>
      %25 = tpu.matmul %22, %24, %cst_15 {dimension_numbers = #tpu.dot_dimension_numbers<[2], [1], [1], [2], [0, 0, 0, 1, 1, 2], [0], [0]>} : vector<2x8x8xf32>, vector<2x8x8xf32>, vector<2x8x8xf32> -> vector<2x8x8xf32>
      "tpu.trace_stop"() : () -> ()
      %c0_16 = arith.constant 0 : index
      %c0_17 = arith.constant 0 : index
      %c0_18 = arith.constant 0 : index
      %c0_19 = arith.constant 0 : index
      %26 = vector.load %arg12[%c0_16, %c0_17, %c0_18, %c0_19] : memref<4x2x1x8xf32, #tpu.memory_space<vmem>>, vector<1x2x1x8xf32>
      %27 = vector.shape_cast %26 : vector<1x2x1x8xf32> to vector<2x1x8xf32>
      %28 = vector.broadcast %27 : vector<2x1x8xf32> to vector<2x8x8xf32>
      %29 = arith.mulf %22, %28 : vector<2x8x8xf32>
      %cst_20 = arith.constant dense<0.000000e+00> : vector<2x8xf32>
      %30 = vector.multi_reduction <add>, %29, %cst_20 [2] : vector<2x8x8xf32> to vector<2x8xf32>
      %31 = vector.shape_cast %30 : vector<2x8xf32> to vector<2x8x1xf32>
      %cst_21 = arith.constant 9.99999997E-7 : f32
      %32 = vector.broadcast %cst_21 : f32 to vector<2x8x1xf32>
      %33 = arith.addf %31, %32 : vector<2x8x1xf32>
      %34 = tpu.reciprocal %33 : vector<2x8x1xf32> -> vector<2x8x1xf32>
      %35 = vector.broadcast %34 : vector<2x8x1xf32> to vector<2x8x8xf32>
      %36 = arith.mulf %25, %35 : vector<2x8x8xf32>
      %37 = vector.shape_cast %36 : vector<2x8x8xf32> to vector<16x8xf32>
      %38 = vector.extract_strided_slice %20 {offsets = [0, 8], sizes = [16, 8], strides = [1, 1]} : vector<16x32xf32> to vector<16x8xf32>
      %39 = vector.shape_cast %38 : vector<16x8xf32> to vector<2x8x8xf32>
      %c1 = arith.constant 1 : index
      %c0_22 = arith.constant 0 : index
      %c0_23 = arith.constant 0 : index
      %c0_24 = arith.constant 0 : index
      %40 = vector.load %arg11[%c1, %c0_22, %c0_23, %c0_24] : memref<4x2x8x8xf32, #tpu.memory_space<vmem>>, vector<1x2x8x8xf32>
      %41 = vector.shape_cast %40 : vector<1x2x8x8xf32> to vector<2x8x8xf32>
      "tpu.trace_start"() <{level = 10 : i32, message = "btd,bde->bte"}> : () -> ()
      %cst_25 = arith.constant dense<0.000000e+00> : vector<2x8x8xf32>
      %42 = tpu.matmul %39, %41, %cst_25 {dimension_numbers = #tpu.dot_dimension_numbers<[2], [1], [1], [2], [0, 0, 0, 1, 1, 2], [0], [0]>} : vector<2x8x8xf32>, vector<2x8x8xf32>, vector<2x8x8xf32> -> vector<2x8x8xf32>
      "tpu.trace_stop"() : () -> ()
      %c1_26 = arith.constant 1 : index
      %c0_27 = arith.constant 0 : index
      %c0_28 = arith.constant 0 : index
      %c0_29 = arith.constant 0 : index
      %43 = vector.load %arg12[%c1_26, %c0_27, %c0_28, %c0_29] : memref<4x2x1x8xf32, #tpu.memory_space<vmem>>, vector<1x2x1x8xf32>
      %44 = vector.shape_cast %43 : vector<1x2x1x8xf32> to vector<2x1x8xf32>
      %45 = vector.broadcast %44 : vector<2x1x8xf32> to vector<2x8x8xf32>
      %46 = arith.mulf %39, %45 : vector<2x8x8xf32>
      %cst_30 = arith.constant dense<0.000000e+00> : vector<2x8xf32>
      %47 = vector.multi_reduction <add>, %46, %cst_30 [2] : vector<2x8x8xf32> to vector<2x8xf32>
      %48 = vector.shape_cast %47 : vector<2x8xf32> to vector<2x8x1xf32>
      %cst_31 = arith.constant 9.99999997E-7 : f32
      %49 = vector.broadcast %cst_31 : f32 to vector<2x8x1xf32>
      %50 = arith.addf %48, %49 : vector<2x8x1xf32>
      %51 = tpu.reciprocal %50 : vector<2x8x1xf32> -> vector<2x8x1xf32>
      %52 = vector.broadcast %51 : vector<2x8x1xf32> to vector<2x8x8xf32>
      %53 = arith.mulf %42, %52 : vector<2x8x8xf32>
      %54 = vector.shape_cast %53 : vector<2x8x8xf32> to vector<16x8xf32>
      %55 = vector.extract_strided_slice %20 {offsets = [0, 16], sizes = [16, 8], strides = [1, 1]} : vector<16x32xf32> to vector<16x8xf32>
      %56 = vector.shape_cast %55 : vector<16x8xf32> to vector<2x8x8xf32>
      %c2 = arith.constant 2 : index
      %c0_32 = arith.constant 0 : index
      %c0_33 = arith.constant 0 : index
      %c0_34 = arith.constant 0 : index
      %57 = vector.load %arg11[%c2, %c0_32, %c0_33, %c0_34] : memref<4x2x8x8xf32, #tpu.memory_space<vmem>>, vector<1x2x8x8xf32>
      %58 = vector.shape_cast %57 : vector<1x2x8x8xf32> to vector<2x8x8xf32>
      "tpu.trace_start"() <{level = 10 : i32, message = "btd,bde->bte"}> : () -> ()
      %cst_35 = arith.constant dense<0.000000e+00> : vector<2x8x8xf32>
      %59 = tpu.matmul %56, %58, %cst_35 {dimension_numbers = #tpu.dot_dimension_numbers<[2], [1], [1], [2], [0, 0, 0, 1, 1, 2], [0], [0]>} : vector<2x8x8xf32>, vector<2x8x8xf32>, vector<2x8x8xf32> -> vector<2x8x8xf32>
      "tpu.trace_stop"() : () -> ()
      %c2_36 = arith.constant 2 : index
      %c0_37 = arith.constant 0 : index
      %c0_38 = arith.constant 0 : index
      %c0_39 = arith.constant 0 : index
      %60 = vector.load %arg12[%c2_36, %c0_37, %c0_38, %c0_39] : memref<4x2x1x8xf32, #tpu.memory_space<vmem>>, vector<1x2x1x8xf32>
      %61 = vector.shape_cast %60 : vector<1x2x1x8xf32> to vector<2x1x8xf32>
      %62 = vector.broadcast %61 : vector<2x1x8xf32> to vector<2x8x8xf32>
      %63 = arith.mulf %56, %62 : vector<2x8x8xf32>
      %cst_40 = arith.constant dense<0.000000e+00> : vector<2x8xf32>
      %64 = vector.multi_reduction <add>, %63, %cst_40 [2] : vector<2x8x8xf32> to vector<2x8xf32>
      %65 = vector.shape_cast %64 : vector<2x8xf32> to vector<2x8x1xf32>
      %cst_41 = arith.constant 9.99999997E-7 : f32
      %66 = vector.broadcast %cst_41 : f32 to vector<2x8x1xf32>
      %67 = arith.addf %65, %66 : vector<2x8x1xf32>
      %68 = tpu.reciprocal %67 : vector<2x8x1xf32> -> vector<2x8x1xf32>
      %69 = vector.broadcast %68 : vector<2x8x1xf32> to vector<2x8x8xf32>
      %70 = arith.mulf %59, %69 : vector<2x8x8xf32>
      %71 = vector.shape_cast %70 : vector<2x8x8xf32> to vector<16x8xf32>
      %72 = vector.extract_strided_slice %20 {offsets = [0, 24], sizes = [16, 8], strides = [1, 1]} : vector<16x32xf32> to vector<16x8xf32>
      %73 = vector.shape_cast %72 : vector<16x8xf32> to vector<2x8x8xf32>
      %c3 = arith.constant 3 : index
      %c0_42 = arith.constant 0 : index
      %c0_43 = arith.constant 0 : index
      %c0_44 = arith.constant 0 : index
      %74 = vector.load %arg11[%c3, %c0_42, %c0_43, %c0_44] : memref<4x2x8x8xf32, #tpu.memory_space<vmem>>, vector<1x2x8x8xf32>
      %75 = vector.shape_cast %74 : vector<1x2x8x8xf32> to vector<2x8x8xf32>
      "tpu.trace_start"() <{level = 10 : i32, message = "btd,bde->bte"}> : () -> ()
      %cst_45 = arith.constant dense<0.000000e+00> : vector<2x8x8xf32>
      %76 = tpu.matmul %73, %75, %cst_45 {dimension_numbers = #tpu.dot_dimension_numbers<[2], [1], [1], [2], [0, 0, 0, 1, 1, 2], [0], [0]>} : vector<2x8x8xf32>, vector<2x8x8xf32>, vector<2x8x8xf32> -> vector<2x8x8xf32>
      "tpu.trace_stop"() : () -> ()
      %c3_46 = arith.constant 3 : index
      %c0_47 = arith.constant 0 : index
      %c0_48 = arith.constant 0 : index
      %c0_49 = arith.constant 0 : index
      %77 = vector.load %arg12[%c3_46, %c0_47, %c0_48, %c0_49] : memref<4x2x1x8xf32, #tpu.memory_space<vmem>>, vector<1x2x1x8xf32>
      %78 = vector.shape_cast %77 : vector<1x2x1x8xf32> to vector<2x1x8xf32>
      %79 = vector.broadcast %78 : vector<2x1x8xf32> to vector<2x8x8xf32>
      %80 = arith.mulf %73, %79 : vector<2x8x8xf32>
      %cst_50 = arith.constant dense<0.000000e+00> : vector<2x8xf32>
      %81 = vector.multi_reduction <add>, %80, %cst_50 [2] : vector<2x8x8xf32> to vector<2x8xf32>
      %82 = vector.shape_cast %81 : vector<2x8xf32> to vector<2x8x1xf32>
      %cst_51 = arith.constant 9.99999997E-7 : f32
      %83 = vector.broadcast %cst_51 : f32 to vector<2x8x1xf32>
      %84 = arith.addf %82, %83 : vector<2x8x1xf32>
      %85 = tpu.reciprocal %84 : vector<2x8x1xf32> -> vector<2x8x1xf32>
      %86 = vector.broadcast %85 : vector<2x8x1xf32> to vector<2x8x8xf32>
      %87 = arith.mulf %76, %86 : vector<2x8x8xf32>
      %88 = vector.shape_cast %87 : vector<2x8x8xf32> to vector<16x8xf32>
      %89 = tpu.concatenate %37, %54, %71, %88 in 1 : vector<16x8xf32>, vector<16x8xf32>, vector<16x8xf32>, vector<16x8xf32> -> vector<16x32xf32>
      %c0_52 = arith.constant 0 : index
      %c0_53 = arith.constant 0 : index
      %90 = vector.load %arg8[%c0_52, %c0_53] : memref<32x32xf32, #tpu.memory_space<vmem>>, vector<32x32xf32>
      %cst_54 = arith.constant dense<0.000000e+00> : vector<16x32xf32>
      %91 = tpu.matmul %89, %90, %cst_54 {dimension_numbers = #tpu.dot_dimension_numbers<[1], [0], [0], [1], [0, 0, 1, 1], [], []>} : vector<16x32xf32>, vector<32x32xf32>, vector<16x32xf32> -> vector<16x32xf32>
      %c0_55 = arith.constant 0 : index
      %c0_56 = arith.constant 0 : index
      %92 = vector.load %arg9[%c0_55, %c0_56] : memref<1x32xf32, #tpu.memory_space<vmem>>, vector<1x32xf32>
      %93 = vector.broadcast %92 : vector<1x32xf32> to vector<16x32xf32>
      %94 = arith.addf %91, %93 : vector<16x32xf32>
      %95 = vector.shape_cast %94 : vector<16x32xf32> to vector<2x8x32xf32>
      %c0_57 = arith.constant 0 : index
      %c0_58 = arith.constant 0 : index
      %c0_59 = arith.constant 0 : index
      %96 = vector.load %arg10[%c0_57, %c0_58, %c0_59] : memref<2x8x32xf32, #tpu.memory_space<vmem>>, vector<2x8x32xf32>
      tpu.vector_store %arg10[%c0_57, %c0_58, %c0_59], %95 {strides = array<i32>} : memref<2x8x32xf32, #tpu.memory_space<vmem>>, vector<2x8x32xf32>,
    } else {
    }
    return
  }
  func.func @transform_0(%arg0: i32, %arg1: i32, %arg2: i32) -> (i32, i32, i32) {
    %c0_i32 = arith.constant 0 : i32
    %c0_i32_0 = arith.constant 0 : i32
    return %arg0, %arg2, %c0_i32 : i32, i32, i32
  }
  func.func @transform_1(%arg0: i32, %arg1: i32, %arg2: i32) -> (i32, i32) {
    %c0_i32 = arith.constant 0 : i32
    %c0_i32_0 = arith.constant 0 : i32
    %c0_i32_1 = arith.constant 0 : i32
    return %c0_i32, %c0_i32_0 : i32, i32
  }
  func.func @transform_2(%arg0: i32, %arg1: i32, %arg2: i32) -> (i32, i32) {
    %c0_i32 = arith.constant 0 : i32
    %c0_i32_0 = arith.constant 0 : i32
    %c0_i32_1 = arith.constant 0 : i32
    return %c0_i32, %c0_i32_0 : i32, i32
  }
  func.func @transform_3(%arg0: i32, %arg1: i32, %arg2: i32) -> (i32, i32) {
    %c0_i32 = arith.constant 0 : i32
    %c0_i32_0 = arith.constant 0 : i32
    %c0_i32_1 = arith.constant 0 : i32
    return %c0_i32, %c0_i32_0 : i32, i32
  }
  func.func @transform_4(%arg0: i32, %arg1: i32, %arg2: i32) -> (i32, i32) {
    %c0_i32 = arith.constant 0 : i32
    %c0_i32_0 = arith.constant 0 : i32
    %c0_i32_1 = arith.constant 0 : i32
    return %c0_i32, %c0_i32_0 : i32, i32
  }
  func.func @transform_5(%arg0: i32, %arg1: i32, %arg2: i32) -> (i32, i32) {
    %c0_i32 = arith.constant 0 : i32
    %c0_i32_0 = arith.constant 0 : i32
    %c0_i32_1 = arith.constant 0 : i32
    return %c0_i32, %c0_i32_0 : i32, i32
  }
  func.func @transform_6(%arg0: i32, %arg1: i32, %arg2: i32) -> (i32, i32) {
    %c0_i32 = arith.constant 0 : i32
    %c0_i32_0 = arith.constant 0 : i32
    %c0_i32_1 = arith.constant 0 : i32
    return %c0_i32, %c0_i32_0 : i32, i32
  }
  func.func @transform_7(%arg0: i32, %arg1: i32, %arg2: i32) -> (i32, i32, i32) {
    %0 = arith.muli %arg1, %arg2 : i32
    %c0_i32 = arith.constant 0 : i32
    %c0_i32_0 = arith.constant 0 : i32
    return %arg0, %0, %c0_i32 : i32, i32, i32
  }
}

</mosaic_0001>

<bundles_post_ra>
// kernel: tpu_custom_call.1
= control target key start
LH: loop header
LB: loop body
LE: loop exit
PB: predicated region body
PF: predicated region fallthrough
CT: control target
= control target key end

     0   :  { %12 = vsyncpa [#allocation5], 0  ;;  %s2474_s0 = inlined_call_operand.hbm [shape: f32[2,8,32], index: 0, kind: input, shape index: {}]   ;;  %s2475_s1 = inlined_call_operand.hbm [shape: f32[32,32], index: 1, kind: input, shape index: {}]   ;;  %s2476_s2 = inlined_call_operand.vmem [shape: f32[1,32], index: 2, kind: input, shape index: {}]   ;;  %s2477_s3 = inlined_call_operand.hbm [shape: f32[32,64], index: 3, kind: input, shape index: {}]   ;;  %s2478_s4 = inlined_call_operand.vmem [shape: f32[1,64], index: 4, kind: input, shape index: {}]   ;;  %s2479_s5 = inlined_call_operand.hbm [shape: f32[32,32], index: 5, kind: input, shape index: {}]   ;;  %s2480_s6 = inlined_call_operand.vmem [shape: f32[1,32], index: 6, kind: input, shape index: {}]   ;;  %s2481_s7 = inlined_call_operand.hbm [shape: f32[2,8,32], index: 7, kind: output, shape index: {}]  }
   0x1   :  { %13 = vsyncpa [#allocation8], 0 }
   0x2   :  { %14 = vsyncpa [#allocation11], 0 }
   0x3   :  { %15 = vsyncpa [#allocation6], 0 }
   0x4   :  { %17 = vsyncpa [#allocation6 + $0x1], 0  ;;  %s2179_s24 = smov 0   ;;  %s2181_s25 = smov 0  }
   0x5   :  { %s2183_s26 = smov 0  }
   0x6 LB: > { %s1748_s27 = sadd.s32 4294967295, %s2114_s26   ;;  %s1749_s28 = sadd.s32 4294967294, %s2114_s26   ;;  %s2114_s26 = sphi %s2183_s26, %s23_s26   ;;  %s2110_s25 = sphi %s2181_s25, %s2486_s25   ;;  %s2106_s24 = sphi %s2179_s24, %s2485_s24  }
   0x7   : > { %p1750_p0 = scmp.ge.s32.totalorder %s2114_s26, 1  ;;  %p231_p1 = scmp.lt.s32.totalorder %s2114_s26, 3 }
   0x8   : > { %p2200_p2 = scmp.eq.s32.totalorder %s1748_s27, 0  ;;  %s260_s10 = sshll.u32 %s2475_s1, 4  ;;  %s261_s10 = int_to_ptr.hbm [resolvable:$true] %s260_s10 }
   0x9   : > { %p2204_p3 = pnand %p1750_p0, %p231_p1  ;;  %s2116_s11 = smov [#allocation7]  }
   0xa   : > { %s262_s12 = sshll.u32 %s2116_s11, 4  ;;  %s38_s14 = sadd.s32 1, %s2110_s25  ;;  %s263_s12 = int_to_ptr.vmem [resolvable:$true] %s262_s12 }
   0xb   : > { %p1808_p4 = pneg %p2204_p3  ;;  %s2117_s15 = smov 128  }
   0xc   : > { %s2118_s16 = smov 8   ;;  %p40_p6 = scmp.ge.s32.totalorder %s38_s14, 2 }
   0xd   : > { %p2215_p5 = pnand %p2200_p2, %p1808_p4  ;;  %s246_s19 = sshll.u32 %s2474_s0, 4  ;;  %s247_s19 = int_to_ptr.hbm [resolvable:$true] %s246_s19 }
   0xe   : > { %s2488_s14 = smov (%p40_p6, %s38_s14), 0  ;;  %s2119_s20 = smov [#allocation4]  }
   0xf   : > { %1814 = dma.hbm_to_vmem [thread:$0]  (!%p2215_p5), %s261_s10, 512, %s263_s12, [#allocation8], %s2117_s15, %s2117_s15, %s2118_s16  }
  0x10   : > { %s248_s21 = sshll.u32 %s2119_s20, 4  ;;  %s277_s8 = sshll.u32 %s2477_s3, 4  ;;  %s249_s21 = int_to_ptr.vmem [resolvable:$true] %s248_s21  ;;  %s278_s8 = int_to_ptr.hbm [resolvable:$true] %s277_s8 }
  0x11   : > { %1811 = dma.hbm_to_vmem [thread:$0]  (!%p2215_p5), %s247_s19, 256, %s249_s21, [#allocation5], %s2117_s15, %s2117_s15, %s2118_s16  }
  0x12   : > { %s294_s11 = sshll.u32 %s2479_s5, 4  ;;  %s2120_s12 = smov [#allocation9]   ;;  %s295_s11 = int_to_ptr.hbm [resolvable:$true] %s294_s11 }
  0x13   : > { %s279_s17 = sshll.u32 %s2120_s12, 4  ;;  %s2121_s18 = smov [#allocation10]   ;;  %s280_s17 = int_to_ptr.vmem [resolvable:$true] %s279_s17 }
  0x14   : > { %1817 = dma.hbm_to_vmem [thread:$0]  (!%p2215_p5), %s278_s8, 512, %s280_s17, [#allocation8], %s2117_s15, %s2117_s15, %s2118_s16  }
  0x15   : > { %s296_s20 = sshll.u32 %s2121_s18, 4  ;;  %315 = sbr.rel (%p2204_p3) target bundleno = 1600 (0x640), region = 48  ;;  %s297_s20 = int_to_ptr.vmem [resolvable:$true] %s296_s20 }
  0x16   : > { %1820 = dma.hbm_to_vmem [thread:$0]  (!%p2215_p5), %s295_s11, 512, %s297_s20, [#allocation11], %s2117_s15, %s2117_s15, %s2118_s16  }
  0x1a   : > { %2089 = dma.done.wait (%p2200_p2), [#allocation5], 256  }
  0x1b   : > { %2091 = vsyncadd (%p2200_p2), [#allocation5], 4294967040 }
  0x1c   : > { %2093 = dma.done.wait (%p2200_p2), [#allocation8], 1024  }
  0x1d   : > { %2095 = vsyncadd (%p2200_p2), [#allocation8], 4294966272 }
  0x1e   : > { %2097 = dma.done.wait (%p2200_p2), [#allocation11], 512  }
  0x1f   : > { %2099 = vsyncadd (%p2200_p2), [#allocation11], 4294966784  ;;  %v2253_v0 = vld [vmem:[#allocation4] sm:$0xff]  ;;  %v2255_v1 = vld [vmem:[#allocation4 + $0x8] sm:$0xff]  ;;  %p1760_p7 = scmp.ne.s32.totalorder %s2106_s24, 0 }
  0x20   : > { %s2123_s13 = smov (!%p1760_p7), 80   ;;  %s2124_s15 = smov (!%p1760_p7), 96  }
  0x21   : > { %366 = sbr.rel (%p1760_p7) target bundleno = 785 (0x311), region = 68  ;;  %s2125_s16 = smov (!%p1760_p7), 88  }
  0x22   : > { %s2126_s19 = smov (!%p1760_p7), 120   ;;  %s2127_s21 = smov (!%p1760_p7), 112  }
  0x23   : > { %s2128_s22 = smov (!%p1760_p7), 104   ;;  %s2129_s23 = smov (!%p1760_p7), 72  }
  0x26   : > { %v392_v2 = vld [vmem:[#allocation9 + $0x18] sm:$0xff]  ;;  %v391_v3 = vld [vmem:[#allocation9 + $0x10] sm:$0xff]  ;;  %v390_v4 = vld [vmem:[#allocation9 + $0x8] sm:$0xff]  ;;  %vm397_vm0 = vcmask 261120   ;;  %vm380_vm1 = vcmask 57344   ;;  %vm371_vm2 = vcmask 64512  }
  0x27   : > { %416 = vmatpush.msra.mxu0 %v392_v2  ;;  %v389_v5 = vld [vmem:[#allocation9] sm:$0xff]  ;;  %v2122_v6 = vmov 0.0   ;;  %v1893_v7 = vld [vmem:[%s2478_s4] ss:$0 sm:$0xff]  ;;  %vm719_vm5 = vcmask 130112   ;;  %vm878_vm6 = vcmask 195712  }
  0x28   : > { %381 = vst.msk [vmem:[#allocation3] sm:$0x1] %vm380_vm1, %v2122_v6  ;;  %vm1037_vm7 = vcmask 261312  }
  0x29   : > { %417 = vmatpush.msra.mxu0 %v391_v3  ;;  %372 = vst.msk [vmem:[#allocation2] sm:$0xff] %vm371_vm2, %v2122_v6 }
  0x2a   : > { %373 = vst.msk [vmem:[#allocation2 + $0x8] sm:$0xff] %vm371_vm2, %v2122_v6 }
  0x2b   : > { %418 = vmatpush.msra.mxu0 %v390_v4  ;;  %374 = vst.msk [vmem:[#allocation2 + $0x10] sm:$0xff] %vm371_vm2, %v2122_v6 }
  0x2c   : > { %375 = vst.msk [vmem:[#allocation2 + $0x18] sm:$0xff] %vm371_vm2, %v2122_v6 }
  0x2d   : > { %419 = vmatpush.msra.mxu0 %v389_v5  ;;  %376 = vst.msk [vmem:[#allocation2 + $0x20] sm:$0xff] %vm371_vm2, %v2122_v6 }
  0x2e   : > { %1761 = vmatmul.msk.f32.vlgmr.msra.gmra.mxu0 %vm397_vm0, %v2253_v0  ;;  %377 = vst.msk [vmem:[#allocation2 + $0x28] sm:$0xff] %vm371_vm2, %v2122_v6 }
  0x2f   : > { %378 = vst.msk [vmem:[#allocation2 + $0x30] sm:$0xff] %vm371_vm2, %v2122_v6  ;;  %v564_v31 = vld [vmem:[#allocation3] sm:$0x1] }
  0x30   : > { %379 = vst.msk [vmem:[#allocation2 + $0x38] sm:$0xff] %vm371_vm2, %v2122_v6 }
  0x31   : > { %382 = vst.msk [vmem:[#allocation3 + $0x1] sm:$0x1] %vm380_vm1, %v2122_v6 }
  0x32   : > { %383 = vst.msk [vmem:[#allocation3 + $0x2] sm:$0x1] %vm380_vm1, %v2122_v6 }
  0x33   : > { %384 = vst.msk [vmem:[#allocation3 + $0x3] sm:$0x1] %vm380_vm1, %v2122_v6 }
  0x34   : > { %385 = vst.msk [vmem:[#allocation3 + $0x4] sm:$0x1] %vm380_vm1, %v2122_v6 }
  0x35   : > { %386 = vst.msk [vmem:[#allocation3 + $0x5] sm:$0x1] %vm380_vm1, %v2122_v6 }
  0x36   : > { %1762 = vmatmul.msk.f32.gmra.mxu0 %vm397_vm0, %v2255_v1  ;;  %387 = vst.msk [vmem:[#allocation3 + $0x6] sm:$0x1] %vm380_vm1, %v2122_v6 }
  0x37   : > { %388 = vst.msk [vmem:[#allocation3 + $0x7] sm:$0x1] %vm380_vm1, %v2122_v6 }
  0x38   : > { %v565_v40 = vld [vmem:[#allocation3 + $0x1] sm:$0x1] }
  0x39   : > { %v717_v63 = vld [vmem:[#allocation3 + $0x2] sm:$0x1] }
  0xab   : > { %v421_v8 = vpop.f32.mrf.mxu0 }
  0xac   : > { %v422_v9 = vadd.f32 %v1893_v7, %v421_v8 }
  0xae   : > { %v431_v10 = vmin.f32 %v422_v9, 0.0  ;;  %784 = vrot.lane.b32.xlu2 %v422_v9, %s2123_s13  ;;  %v429_v16 = vadd.f32 1.0, %v422_v9  ;;  %vm427_vm3 = vcmp.gt.f32.partialorder %v422_v9, 0.0 }
  0xb0   : > { %v433_v11 = vmul.f32 1.442695, %v431_v10 }
  0xb2   : > { %1894 = vpow2.f32 %v433_v11 }
  0xb3   : > { %v424_v12 = vpop.f32.mrf.mxu0 }
  0xb4   : > { %v2280_v13 = vadd.f32 %v1893_v7, %v424_v12 }
  0xb6   : > { %v432_v14 = vmin.f32 %v2280_v13, 0.0  ;;  %v1883_v15 = vpack.i.bf16 %v2280_v13, %v422_v9  ;;  %v430_v23 = vadd.f32 1.0, %v2280_v13  ;;  %vm428_vm4 = vcmp.gt.f32.partialorder %v2280_v13, 0.0 }
  0xb8   : > { %v1895_v17 = vpop.eup %1894  ;;  %v435_v18 = vmul.f32 1.442695, %v432_v14  ;;  %1884 = vrot.lane.b32.xlu0 %v1883_v15, %s2124_s15  ;;  %1889 = vrot.lane.b32.xlu2 %v1883_v15, %s2125_s16 }
  0xb9   : > { %v2284_v19 = vsel %vm427_vm3, %v429_v16, %v1895_v17 }
  0xba   : > { %1896 = vpow2.f32 %v435_v18  ;;  %589 = vrot.lane.b32.xlu1 %v2284_v19, %s2126_s19  ;;  %v566_v20 = vsel %vm371_vm2, %v2284_v19, 0.0  ;;  %v720_v36 = vsel %vm719_vm5, %v2284_v19, 0.0  ;;  %v879_v11 = vsel %vm878_vm6, %v2284_v19, 0.0 }
  0xbb   : > { %v567_v21 = vrot.slane %v566_v20, 4  ;;  %v721_v38 = vrot.slane %v720_v36, 4  ;;  %v880_v12 = vrot.slane %v879_v11, 4 }
  0xbd   : > { %v568_v22 = vadd.f32 %v567_v21, %v566_v20  ;;  %v722_v42 = vadd.f32 %v721_v38, %v720_v36  ;;  %v881_v14 = vadd.f32 %v880_v12, %v879_v11  ;;  %v718_v20 = vld [vmem:[#allocation3 + $0x3] sm:$0x1] }
  0xbf   : > { %v569_v24 = vrot.slane %v568_v22, 2  ;;  %v723_v44 = vrot.slane %v722_v42, 2  ;;  %v882_v15 = vrot.slane %v881_v14, 2 }
  0xc0   : > { %v1897_v25 = vpop.eup %1896  ;;  %749 = vrot.lane.b32.xlu2 %v2284_v19, %s2127_s21 }
  0xc1   : > { %v570_v26 = vadd.f32 %v569_v24, %v568_v22  ;;  %v2294_v27 = vsel %vm428_vm4, %v430_v23, %v1897_v25  ;;  %v724_v45 = vadd.f32 %v723_v44, %v722_v42  ;;  %v883_v16 = vadd.f32 %v882_v15, %v881_v14  ;;  %v440_v42 = vld [vmem:[#allocation2 + $0x8] sm:$0xff]  ;;  %v587_v14 = vld [vmem:[#allocation2 + $0x18] sm:$0xff] }
  0xc2   : > { %v573_v28 = vsel %vm371_vm2, %v2294_v27, 0.0  ;;  %v727_v59 = vsel %vm719_vm5, %v2294_v27, 0.0 }
  0xc3   : > { %v571_v29 = vrot.slane %v570_v26, 1  ;;  %v574_v30 = vrot.slane %v573_v28, 4  ;;  %v725_v46 = vrot.slane %v724_v45, 1  ;;  %v728_v61 = vrot.slane %v727_v59, 4 }
  0xc4   : > { %v884_v17 = vrot.slane %v883_v16, 1 }
  0xc5   : > { %v572_v32 = vadd.f32 %v571_v29, %v570_v26  ;;  %v575_v33 = vadd.f32 %v574_v30, %v573_v28  ;;  %v726_v47 = vadd.f32 %v725_v46, %v724_v45  ;;  %v729_v62 = vadd.f32 %v728_v61, %v727_v59  ;;  %v876_v30 = vld [vmem:[#allocation3 + $0x4] sm:$0x1] }
  0xc6   : > { %v885_v18 = vadd.f32 %v884_v17, %v883_v16  ;;  %v886_v29 = vsel %vm878_vm6, %v2294_v27, 0.0  ;;  %v907_v17 = vld [vmem:[#allocation2 + $0x38] sm:$0xff] }
  0xc7   : > { %v580_v34 = vadd.f32 %v572_v32, %v564_v31  ;;  %v576_v35 = vrot.slane %v575_v33, 2  ;;  %v730_v3 = vrot.slane %v729_v62, 2  ;;  %v887_v31 = vrot.slane %v886_v29, 4 }
  0xc8   : > { %908 = vrot.lane.b32.xlu2 %v2284_v19, %s2128_s22 }
  0xc9   : > { %583 = vst.msk [vmem:[#allocation3] sm:$0x1] %vm380_vm1, %v580_v34  ;;  %v577_v37 = vadd.f32 %v576_v35, %v575_v33  ;;  %v731_v5 = vadd.f32 %v730_v3, %v729_v62  ;;  %v888_v34 = vadd.f32 %v887_v31, %v886_v29  ;;  %v1038_v35 = vsel %vm1037_vm7, %v2284_v19, 0.0 }
  0xca   : > { %v1039_v38 = vrot.slane %v1038_v35, 4 }
  0xcb   : > { %v578_v39 = vrot.slane %v577_v37, 1  ;;  %v732_v6 = vrot.slane %v731_v5, 1 }
  0xcd   : > { %v579_v41 = vadd.f32 %v578_v39, %v577_v37  ;;  %v733_v7 = vadd.f32 %v732_v6, %v731_v5  ;;  %v889_v37 = vrot.slane %v888_v34, 2 }
  0xcf   : > { %v581_v43 = vadd.f32 %v579_v41, %v565_v40  ;;  %v890_v39 = vadd.f32 %v889_v37, %v888_v34  ;;  %v1040_v40 = vadd.f32 %v1039_v38, %v1038_v35  ;;  %v1045_v41 = vsel %vm1037_vm7, %v2294_v27, 0.0 }
  0xd0   : > { %810 = vrot.lane.b32.xlu2 %v2294_v27, %s2127_s21  ;;  %v1046_v46 = vrot.slane %v1045_v41, 4 }
  0xd1   : > { %584 = vst.msk [vmem:[#allocation3 + $0x1] sm:$0x1] %vm380_vm1, %v581_v43  ;;  %v891_v44 = vrot.slane %v890_v39, 1  ;;  %v1041_v45 = vrot.slane %v1040_v40, 2 }
  0xd8   : > { %969 = vrot.lane.b32.xlu2 %v2294_v27, %s2128_s22 }
  0xda   : > { %441 = vxpose.xlu0.b32.start.end [1/1] (short) (narrow) %v2284_v19, 8  ;;  %v892_v19 = vadd.f32 %v891_v44, %v890_v39 }
  0xe0   : > { %736 = vrot.lane.b32.xlu2 %v726_v47, %s2126_s19 }
  0xe8   : > { %943 = vrot.lane.b32.xlu2 %v422_v9, %s2129_s23 }
  0xef   : > { %501 = vxpose.xlu1.b32.start.end [1/1] (short) (narrow) %v2294_v27, 8 }
 0x108   : > { %v785_v48 = vpop.permute.xlu2 %784 }
 0x112   : > { %v1890_v49 = vpop.permute.xlu2 %1889 }
 0x113   : > { %v1891_v50 = vunpack.i.l.bf16 %v1890_v49  ;;  %v1892_v58 = vunpack.i.h.bf16 %v1890_v49  ;;  %v1047_v49 = vadd.f32 %v1046_v46, %v1045_v41 }
 0x115   : > { %645 = vmatpush.msra.mxu3 %v1891_v50 }
 0x11a   : > { %v750_v51 = vpop.permute.xlu2 %749 }
 0x122   : > { %v909_v52 = vpop.permute.xlu2 %908 }
 0x12a   : > { %v1885_v53 = vpop.permute.xlu0 %1884  ;;  %v811_v54 = vpop.permute.xlu2 %810 }
 0x12b   : > { %v1886_v55 = vunpack.i.l.bf16 %v1885_v53  ;;  %v1887_v56 = vunpack.i.h.bf16 %v1885_v53 }
 0x12c   : > { %v590_v57 = vpop.permute.xlu1 %589 }
 0x12d   : > { %496 = vmatpush.msra.mxu1 %v1886_v55  ;;  %555 = vmatpush.msra.mxu2 %v1887_v56  ;;  %v439_v56 = vld [vmem:[#allocation2] sm:$0xff] }
 0x12e   : > { %592 = vxpose.xlu2.b32.start.end [1/1] (short) (narrow) %v590_v57, 8 }
 0x12f   : > { %707 = vmatpush.msrb.mxu1 %v1892_v58  ;;  %805 = vmatpush.msrb.mxu2 %v785_v48  ;;  %v1042_v48 = vadd.f32 %v1041_v45, %v1040_v40 }
 0x131   : > { %v1043_v50 = vrot.slane %v1042_v48, 1 }
 0x132   : > { %v970_v60 = vpop.permute.xlu2 %969 }
 0x136   : > { %813 = vxpose.xlu2.b32.start.end [1/1] (short) (narrow) %v811_v54, 8 }
 0x13a   : > { %v737_v2 = vpop.permute.xlu2 %736 }
 0x13b   : > { %v742_v4 = vadd.f32 %v737_v2, %v717_v63  ;;  %v1035_v63 = vld [vmem:[#allocation3 + $0x6] sm:$0x1] }
 0x13d   : > { %744 = vst.msk [vmem:[#allocation3 + $0x2] sm:$0x1] %vm380_vm1, %v742_v4  ;;  %v1036_v4 = vld [vmem:[#allocation3 + $0x7] sm:$0x1] }
 0x13e   : > { %972 = vxpose.xlu2.b32.start.end [1/1] (short) (narrow) %v970_v60, 8  ;;  %v877_v60 = vld [vmem:[#allocation3 + $0x5] sm:$0x1] }
 0x142   : > { %v944_v9 = vpop.permute.xlu2 %943 }
 0x146   : > { %911 = vxpose.xlu2.b32.start.end [1/1] (short) (narrow) %v909_v52, 8  ;;  %v1044_v52 = vadd.f32 %v1043_v50, %v1042_v48 }
 0x148   : > { %738 = vrot.lane.b32.xlu0 %v733_v7, %s2126_s19  ;;  %v586_v7 = vld [vmem:[#allocation2 + $0x10] sm:$0xff] }
 0x149   : > { %651 = vrot.lane.b32.xlu1 %v2294_v27, %s2126_s19 }
 0x16a   : > { %752 = vxpose.xlu0.b32.start.end [1/1] (short) (narrow) %v750_v51, 8  ;;  %v1048_v51 = vrot.slane %v1047_v49, 2 }
 0x16c   : > { %v1049_v27 = vadd.f32 %v1048_v51, %v1047_v49 }
 0x16e   : > { %v1050_v53 = vrot.slane %v1049_v27, 1 }
 0x17e   : > { %v457_v8 = vpop.trf.xlu0 }
 0x17f   : > { %1763 = vmatmul.msk.f32.vlgmr.msra.gmra.mxu1 %vm371_vm2, %v457_v8 }
 0x180   : > { %964 = vmatpush.msra.mxu1 %v944_v9  ;;  %v747_v9 = vld [vmem:[#allocation2 + $0x20] sm:$0xff] }
 0x193   : > { %v517_v10 = vpop.trf.xlu1 }
 0x194   : > { %1764 = vmatmul.msk.f32.vlgmr.msra.gmra.mxu2 %vm371_vm2, %v517_v10 }
 0x1af   : > { %895 = vrot.lane.b32.xlu2 %v885_v18, %s2127_s21 }
 0x1ba   : > { %v739_v21 = vpop.permute.xlu0 %738 }
 0x1bb   : > { %v743_v22 = vadd.f32 %v739_v21, %v718_v20  ;;  %v652_v23 = vpop.permute.xlu1 %651  ;;  %v906_v21 = vld [vmem:[#allocation2 + $0x30] sm:$0xff] }
 0x1bc   : > { %654 = vxpose.xlu1.b32.start.end [1/1] (short) (narrow) %v652_v23, 8 }
 0x1bd   : > { %745 = vst.msk [vmem:[#allocation3 + $0x3] sm:$0x1] %vm380_vm1, %v743_v22 }
 0x1c7   : > { %v608_v24 = vpop.trf.xlu2 }
 0x1c8   : > { %1765 = vmatmul.msk.f32.vlgmr.msra.gmra.mxu3 %vm371_vm2, %v608_v24  ;;  %v748_v24 = vld [vmem:[#allocation2 + $0x28] sm:$0xff] }
 0x1cf   : > { %v829_v25 = vpop.trf.xlu2 }
 0x1d7   : > { %v988_v26 = vpop.trf.xlu2 }
 0x1d8   : > { %1004 = vrot.lane.b32.xlu0 %v2280_v13, %s2129_s23 }
 0x1df   : > { %v927_v28 = vpop.trf.xlu2 }
 0x1fc   : > { %v498_v57 = vpop.f32.mrf.mxu1 }
 0x1fd   : > { %v560_v58 = vadd.f32 %v498_v57, %v439_v56 }
 0x1ff   : > { %562 = vst.msk [vmem:[#allocation2] sm:$0xff] %vm371_vm2, %v560_v58 }
 0x209   : > { %v896_v32 = vpop.permute.xlu2 %895 }
 0x20a   : > { %v901_v33 = vadd.f32 %v896_v32, %v876_v30 }
 0x20c   : > { %903 = vst.msk [vmem:[#allocation3 + $0x4] sm:$0x1] %vm380_vm1, %v901_v33 }
 0x20e   : > { %v768_v36 = vpop.trf.xlu0 }
 0x20f   : > { %1767 = vmatmul.msk.f32.vlgmr.msrb.gmra.mxu2 %vm371_vm2, %v768_v36 }
 0x216   : > { %845 = vrot.lane.b32.xlu1 %v2280_v13, %s2123_s13  ;;  %v1051_v13 = vadd.f32 %v1050_v53, %v1049_v27 }
 0x217   : > { %v557_v43 = vpop.f32.mrf.mxu2 }
 0x218   : > { %v561_v47 = vadd.f32 %v557_v43, %v440_v42 }
 0x21a   : > { %563 = vst.msk [vmem:[#allocation2 + $0x8] sm:$0xff] %vm371_vm2, %v561_v47 }
 0x21e   : > { %897 = vrot.lane.b32.xlu1 %v892_v19, %s2127_s21 }
 0x226   : > { %1054 = vrot.lane.b32.xlu1 %v1044_v52, %s2128_s22 }
 0x22e   : > { %1056 = vrot.lane.b32.xlu1 %v1051_v13, %s2128_s22 }
 0x24a   : > { %v1005_v54 = vpop.permute.xlu0 %1004 }
 0x24b   : > { %1025 = vmatpush.msra.mxu2 %v1005_v54  ;;  %v647_v8 = vpop.f32.mrf.mxu3 }
 0x24c   : > { %1770 = vmatmul.msk.f32.vlgmr.msra.gmra.mxu2 %vm371_vm2, %v988_v26  ;;  %v712_v11 = vadd.f32 %v647_v8, %v586_v7 }
 0x24e   : > { %714 = vst.msk [vmem:[#allocation2 + $0x10] sm:$0xff] %vm371_vm2, %v712_v11 }
 0x260   : > { %v670_v55 = vpop.trf.xlu1 }
 0x261   : > { %1766 = vmatmul.msk.f32.vlgmr.msrb.gmra.mxu1 %vm371_vm2, %v670_v55 }
 0x269   : > { %1769 = vmatmul.msk.f32.vlgmr.msra.gmra.mxu1 %vm371_vm2, %v927_v28 }
 0x288   : > { %v846_v59 = vpop.permute.xlu1 %845 }
 0x289   : > { %866 = vmatpush.msrb.mxu3 %v846_v59 }
 0x28a   : > { %1768 = vmatmul.msk.f32.vlgmr.msrb.gmra.mxu3 %vm371_vm2, %v829_v25 }
 0x290   : > { %v898_v61 = vpop.permute.xlu1 %897 }
 0x291   : > { %v902_v62 = vadd.f32 %v898_v61, %v877_v60 }
 0x292   : > { %v807_v10 = vpop.f32.mrf.mxu2 }
 0x293   : > { %904 = vst.msk [vmem:[#allocation3 + $0x5] sm:$0x1] %vm380_vm1, %v902_v62  ;;  %v871_v12 = vadd.f32 %v807_v10, %v747_v9 }
 0x295   : > { %873 = vst.msk [vmem:[#allocation2 + $0x20] sm:$0xff] %vm371_vm2, %v871_v12 }
 0x298   : > { %v1055_v2 = vpop.permute.xlu1 %1054 }
 0x299   : > { %v1060_v3 = vadd.f32 %v1055_v2, %v1035_v63 }
 0x29b   : > { %1062 = vst.msk [vmem:[#allocation3 + $0x6] sm:$0x1] %vm380_vm1, %v1060_v3 }
 0x2a0   : > { %v1057_v5 = vpop.permute.xlu1 %1056 }
 0x2a1   : > { %v1061_v6 = vadd.f32 %v1057_v5, %v1036_v4 }
 0x2a3   : > { %1063 = vst.msk [vmem:[#allocation3 + $0x7] sm:$0x1] %vm380_vm1, %v1061_v6 }
 0x2cf   : > { %v1027_v18 = vpop.f32.mrf.mxu2 }
 0x2d0   : > { %v1031_v20 = vadd.f32 %v1027_v18, %v907_v17 }
 0x2d2   : > { %1033 = vst.msk [vmem:[#allocation2 + $0x38] sm:$0xff] %vm371_vm2, %v1031_v20 }
 0x2de   : > { %v709_v15 = vpop.f32.mrf.mxu1 }
 0x2df   : > { %v713_v16 = vadd.f32 %v709_v15, %v587_v14 }
 0x2e1   : > { %715 = vst.msk [vmem:[#allocation2 + $0x18] sm:$0xff] %vm371_vm2, %v713_v16 }
 0x2e6   : > { %v966_v22 = vpop.f32.mrf.mxu1 }
 0x2e7   : > { %v1030_v23 = vadd.f32 %v966_v22, %v906_v21 }
 0x2e9   : > { %1032 = vst.msk [vmem:[#allocation2 + $0x30] sm:$0xff] %vm371_vm2, %v1030_v23 }
 0x30d   : > { %v868_v25 = vpop.f32.mrf.mxu3 }
 0x30e   : > { %v872_v26 = vadd.f32 %v868_v25, %v748_v24 }
 0x310   : > { %874 = vst.msk [vmem:[#allocation2 + $0x28] sm:$0xff] %vm371_vm2, %v872_v26 }
 0x311 PF: > { %p1771_p8 = scmp.ne.s32.totalorder %s2106_s24, 1 }
 0x312   : > { %s2130_s9 = smov (!%p1771_p8), 120   ;;  %s2131_s10 = smov (!%p1771_p8), 112  }
 0x313   : > { %1067 = sbr.rel (%p1771_p8) target bundleno = 1596 (0x63c), region = 76  ;;  %s2132_s11 = smov (!%p1771_p8), 104  }
 0x314   : > { %s2133_s12 = smov (!%p1771_p8), 16   ;;  %s2134_s17 = smov (!%p1771_p8), 24  }
 0x315   : > { %s2135_s18 = smov (!%p1771_p8), 8  }
 0x318   : > { %v1071_v28 = vld [vmem:[#allocation7 + $0x18] sm:$0xff]  ;;  %v1070_v29 = vld [vmem:[#allocation7 + $0x10] sm:$0xff]  ;;  %v1069_v30 = vld [vmem:[#allocation7 + $0x8] sm:$0xff]  ;;  %vm1076_vm8 = vcmask 261120   ;;  %vm1120_vm9 = vcmask 64512  }
 0x319   : > { %1095 = vmatpush.msra.mxu0 %v1071_v28  ;;  %v1068_v31 = vld [vmem:[#allocation7] sm:$0xff]  ;;  %v1118_v32 = vld [vmem:[#allocation2] sm:$0xff]  ;;  %v1119_v33 = vld [vmem:[#allocation2 + $0x8] sm:$0xff] }
 0x31a   : > { %1139 = vmatpush.msra.mxu1 %v1118_v32  ;;  %1162 = vmatpush.msra.mxu2 %v1119_v33  ;;  %v1898_v34 = vld [vmem:[%s2476_s2] ss:$0 sm:$0xff]  ;;  %v1329_v44 = vld [vmem:[#allocation2 + $0x28] sm:$0xff]  ;;  %v1899_v19 = vld [vmem:[#allocation3 + $0x4] ss:$0 sm:$0xff] }
 0x31b   : > { %1096 = vmatpush.msra.mxu0 %v1070_v29  ;;  %1373 = vmatpush.msra.mxu3 %v1329_v44  ;;  %v1900_v48 = vld [vmem:[#allocation3 + $0x6] ss:$0 sm:$0xff]  ;;  %v1902_v49 = vld [vmem:[#allocation3 + $0x2] ss:$0 sm:$0xff]  ;;  %v1901_v50 = vld [vmem:[#allocation3 + $0x5] ss:$0 sm:$0xff] }
 0x31c   : > { %v1903_v51 = vld [vmem:[#allocation3 + $0x7] ss:$0 sm:$0xff]  ;;  %v1904_v52 = vld [vmem:[#allocation3 + $0x3] ss:$0 sm:$0xff]  ;;  %v1216_v27 = vld [vmem:[#allocation2 + $0x10] sm:$0xff] }
 0x31d   : > { %1097 = vmatpush.msra.mxu0 %v1069_v30  ;;  %v1217_v53 = vld [vmem:[#allocation2 + $0x18] sm:$0xff]  ;;  %v1328_v13 = vld [vmem:[#allocation2 + $0x20] sm:$0xff]  ;;  %v1440_v55 = vld [vmem:[#allocation2 + $0x30] sm:$0xff] }
 0x31e   : > { %1261 = vmatpush.msrb.mxu1 %v1217_v53  ;;  %1349 = vmatpush.msrb.mxu2 %v1328_v13  ;;  %v1441_v56 = vld [vmem:[#allocation2 + $0x38] sm:$0xff]  ;;  %v1905_v26 = vld [vmem:[#allocation3 + $0x1] ss:$0 sm:$0xff]  ;;  %v1906_v28 = vld [vmem:[#allocation3] ss:$0 sm:$0xff] }
 0x31f   : > { %1098 = vmatpush.msra.mxu0 %v1068_v31 }
 0x320   : > { %1772 = vmatmul.msk.f32.vlgmr.msra.gmra.mxu0 %vm1076_vm8, %v2253_v0 }
 0x321   : > { %1237 = vmatpush.msrb.mxu0 %v1216_v27 }
 0x328   : > { %1773 = vmatmul.msk.f32.gmra.mxu0 %vm1076_vm8, %v2255_v1 }
 0x39d   : > { %v1100_v35 = vpop.f32.mrf.mxu0 }
 0x39e   : > { %v1101_v36 = vadd.f32 %v1898_v34, %v1100_v35 }
 0x3a0   : > { %v1110_v37 = vmin.f32 %v1101_v36, 0.0  ;;  %v1108_v0 = vadd.f32 1.0, %v1101_v36  ;;  %vm1106_vm10 = vcmp.gt.f32.partialorder %v1101_v36, 0.0 }
 0x3a2   : > { %v1112_v38 = vmul.f32 1.442695, %v1110_v37 }
 0x3a4   : > { %1908 = vpow2.f32 %v1112_v38 }
 0x3a5   : > { %v1103_v39 = vpop.f32.mrf.mxu0 }
 0x3a6   : > { %v1104_v40 = vadd.f32 %v1898_v34, %v1103_v39 }
 0x3a8   : > { %v1111_v41 = vmin.f32 %v1104_v40, 0.0  ;;  %v1109_v45 = vadd.f32 1.0, %v1104_v40  ;;  %vm1107_vm11 = vcmp.gt.f32.partialorder %v1104_v40, 0.0 }
 0x3aa   : > { %v1909_v42 = vpop.eup %1908  ;;  %v1114_v1 = vmul.f32 1.442695, %v1111_v41 }
 0x3ab   : > { %v2361_v43 = vsel %vm1106_vm10, %v1108_v0, %v1909_v42 }
 0x3ac   : > { %1910 = vpow2.f32 %v1114_v1  ;;  %1218 = vrot.lane.b32.xlu1 %v2361_v43, %s2130_s9  ;;  %1774 = vmatmul.msk.f32.vlgmr.msra.gmra.mxu1 %vm1120_vm9, %v2361_v43  ;;  %v1175_v30 = vmul.f32 %v1906_v28, %v2361_v43 }
 0x3ad   : > { %1461 = vmatpush.msra.mxu1 %v1440_v55 }
 0x3ae   : > { %v1177_v32 = vsel %vm1120_vm9, %v1175_v30, 0.0 }
 0x3b2   : > { %v1911_v46 = vpop.eup %1910 }
 0x3b3   : > { %v2367_v47 = vsel %vm1107_vm11, %v1109_v45, %v1911_v46 }
 0x3b4   : > { %1354 = vrot.lane.b32.xlu2 %v2367_v47, %s2131_s10  ;;  %1242 = vrot.lane.b32.xlu0 %v2367_v47, %s2130_s9  ;;  %v1176_v29 = vmul.f32 %v1905_v26, %v2367_v47 }
 0x3b5   : > { %1775 = vmatmul.msk.f32.vlgmr.msra.gmra.mxu2 %vm1120_vm9, %v2367_v47  ;;  %1442 = vrot.lane.b32.xlu1 %v2361_v43, %s2132_s11 }
 0x3b6   : > { %1485 = vmatpush.msra.mxu2 %v1441_v56  ;;  %v1180_v31 = vsel %vm1120_vm9, %v1176_v29, 0.0 }
 0x3bc   : > { %1466 = vrot.lane.b32.xlu2 %v2367_v47, %s2132_s11  ;;  %1330 = vrot.lane.b32.xlu0 %v2361_v43, %s2131_s10 }
 0x3bd   : > { %1385 = vrot.lane.b32.xlu1 %v1899_v19, %s2133_s12 }
 0x3c4   : > { %1497 = vrot.lane.b32.xlu2 %v1900_v48, %s2134_s17  ;;  %1273 = vrot.lane.b32.xlu0 %v1902_v49, %s2135_s18 }
 0x3c5   : > { %1387 = vrot.lane.b32.xlu1 %v1901_v50, %s2133_s12 }
 0x3cc   : > { %1499 = vrot.lane.b32.xlu2 %v1903_v51, %s2134_s17  ;;  %1275 = vrot.lane.b32.xlu0 %v1904_v52, %s2135_s18 }
 0x40e   : > { %v1355_v54 = vpop.permute.xlu2 %1354 }
 0x40f   : > { %1779 = vmatmul.msk.f32.vlgmr.msra.gmra.mxu3 %vm1120_vm9, %v1355_v54 }
 0x416   : > { %v1467_v57 = vpop.permute.xlu2 %1466 }
 0x41e   : > { %v1498_v58 = vpop.permute.xlu2 %1497  ;;  %v1219_v59 = vpop.permute.xlu1 %1218 }
 0x41f   : > { %v1503_v60 = vmul.f32 %v1498_v58, %v2361_v43  ;;  %1776 = vmatmul.msk.f32.vlgmr.msrb.gmra.mxu0 %vm1120_vm9, %v1219_v59 }
 0x421   : > { %1507 = vrot.lane.b32.xlu2 %v1503_v60, %s2132_s11 }
 0x426   : > { %v1500_v61 = vpop.permute.xlu2 %1499  ;;  %v1243_v62 = vpop.permute.xlu0 %1242 }
 0x427   : > { %v1504_v63 = vmul.f32 %v1500_v61, %v2367_v47  ;;  %v1443_v2 = vpop.permute.xlu1 %1442  ;;  %1777 = vmatmul.msk.f32.vlgmr.msrb.gmra.mxu1 %vm1120_vm9, %v1243_v62 }
 0x429   : > { %1509 = vrot.lane.b32.xlu2 %v1504_v63, %s2132_s11  ;;  %v2415_v34 = vpop.f32.mrf.mxu1 }
 0x42e   : > { %v1331_v3 = vpop.permute.xlu0 %1330 }
 0x42f   : > { %v1386_v4 = vpop.permute.xlu1 %1385  ;;  %1778 = vmatmul.msk.f32.vlgmr.msrb.gmra.mxu2 %vm1120_vm9, %v1331_v3  ;;  %1780 = vmatmul.msk.f32.vlgmr.msra.gmra.mxu1 %vm1120_vm9, %v1443_v2 }
 0x430   : > { %v1391_v5 = vmul.f32 %v1386_v4, %v2361_v43 }
 0x432   : > { %1395 = vrot.lane.b32.xlu1 %v1391_v5, %s2131_s10 }
 0x436   : > { %v1274_v6 = vpop.permute.xlu0 %1273 }
 0x437   : > { %v1388_v7 = vpop.permute.xlu1 %1387  ;;  %v1279_v8 = vmul.f32 %v1274_v6, %v2361_v43  ;;  %1781 = vmatmul.msk.f32.vlgmr.msra.gmra.mxu2 %vm1120_vm9, %v1467_v57 }
 0x438   : > { %v1392_v9 = vmul.f32 %v1388_v7, %v2367_v47  ;;  %v2420_v52 = vpop.f32.mrf.mxu2 }
 0x439   : > { %1283 = vrot.lane.b32.xlu0 %v1279_v8, %s2130_s9 }
 0x43a   : > { %1397 = vrot.lane.b32.xlu1 %v1392_v9, %s2131_s10 }
 0x43e   : > { %v1276_v10 = vpop.permute.xlu0 %1275 }
 0x43f   : > { %v1280_v11 = vmul.f32 %v1276_v10, %v2367_v47 }
 0x441   : > { %1285 = vrot.lane.b32.xlu0 %v1280_v11, %s2130_s9 }
 0x47b   : > { %v1508_v12 = vpop.permute.xlu2 %1507 }
 0x47c   : > { %v1513_v14 = vsel %vm1120_vm9, %v1508_v12, 0.0 }
 0x47d   : > { %1514 = vadd.xlane.f32.xlu2 %v1513_v14 }
 0x483   : > { %v1510_v17 = vpop.permute.xlu2 %1509 }
 0x484   : > { %v1516_v21 = vsel %vm1120_vm9, %v1510_v17, 0.0 }
 0x49c   : > { %v1239_v28 = vpop.f32.mrf.mxu0 }
 0x4a4   : > { %v1396_v15 = vpop.permute.xlu1 %1395  ;;  %v2417_v37 = vpop.f32.mrf.mxu1 }
 0x4a5   : > { %v1401_v16 = vsel %vm1120_vm9, %v1396_v15, 0.0 }
 0x4a6   : > { %1402 = vadd.xlane.f32.xlu1 %v1401_v16 }
 0x4ab   : > { %v1284_v18 = vpop.permute.xlu0 %1283 }
 0x4ac   : > { %v1289_v20 = vsel %vm1120_vm9, %v1284_v18, 0.0  ;;  %v1398_v22 = vpop.permute.xlu1 %1397  ;;  %v1463_v44 = vpop.f32.mrf.mxu1 }
 0x4ad   : > { %1290 = vadd.xlane.f32.xlu0 %v1289_v20  ;;  %v1404_v24 = vsel %vm1120_vm9, %v1398_v22, 0.0 }
 0x4ae   : > { %1517 = vadd.xlane.f32.xlu1 %v1516_v21 }
 0x4b2   : > { %v1351_v2 = vpop.f32.mrf.mxu2 }
 0x4b3   : > { %v1286_v23 = vpop.permute.xlu0 %1285 }
 0x4b4   : > { %v1292_v25 = vsel %vm1120_vm9, %v1286_v23, 0.0 }
 0x4b5   : > { %1405 = vadd.xlane.f32.xlu0 %v1404_v24  ;;  %1293 = vadd.xlane.f32.xlu2 %v1292_v25 }
 0x4bd   : > { %1181 = vadd.xlane.f32.xlu0 %v1180_v31  ;;  %1178 = vadd.xlane.f32.xlu2 %v1177_v32  ;;  %v1487_v32 = vpop.f32.mrf.mxu2 }
 0x4f0   : > { %v1515_v33 = vpop.xlane.xlu2 %1514 }
 0x4f1   : > { %v1519_v35 = vadd.f32 1e-06, %v1515_v33 }
 0x4f3   : > { %1912 = vrcp.f32 %v1519_v35  ;;  %v1532_v40 = vand.u32 2147483648, %v1519_v35  ;;  %v1530_v0 = vand.u32 2147483647, %v1519_v35  ;;  %vm1526_vm13 = vweird.f32 %v1519_v35 }
 0x4f5   : > { %v1533_v1 = vor.u32 1.1754944e-38, %v1532_v40  ;;  %vm1531_vm15 = vcmp.eq.f32.partialorder %v1530_v0, 8.507059e+37 }
 0x4f9   : > { %v1913_v36 = vpop.eup %1912 }
 0x4fa   : > { %v1522_v38 = vmul.f32 %v1913_v36, %v1519_v35  ;;  %vm1527_vm12 = vweird.f32 %v1913_v36 }
 0x4fb   : > { %vm1528_vm14 = vmor %vm1526_vm13, %vm1527_vm12 }
 0x4fc   : > { %v1523_v39 = vsub.f32 1.0, %v1522_v38 }
 0x4fe   : > { %v1524_v41 = vmul.f32 %v1913_v36, %v1523_v39 }
 0x500   : > { %v1525_v42 = vadd.f32 %v1913_v36, %v1524_v41 }
 0x502   : > { %v1529_v43 = vsel %vm1528_vm14, %v1913_v36, %v1525_v42 }
 0x503   : > { %v1534_v45 = vsel %vm1531_vm15, %v1533_v1, %v1529_v43 }
 0x504   : > { %v1549_v46 = vmul.f32 %v1534_v45, %v1463_v44 }
 0x506   : > { %1569 = vrot.lane.b32.xlu0 %v1549_v46, %s2134_s17 }
 0x519   : > { %v1403_v47 = vpop.xlane.xlu1 %1402 }
 0x51a   : > { %v1407_v19 = vadd.f32 1e-06, %v1403_v47 }
 0x51c   : > { %1914 = vrcp.f32 %v1407_v19  ;;  %v1420_v54 = vand.u32 2147483648, %v1407_v19  ;;  %v1418_v56 = vand.u32 2147483647, %v1407_v19  ;;  %vm1414_vm1 = vweird.f32 %v1407_v19 }
 0x51e   : > { %v1421_v4 = vor.u32 1.1754944e-38, %v1420_v54  ;;  %vm1419_vm3 = vcmp.eq.f32.partialorder %v1418_v56, 8.507059e+37  ;;  %v1585_v54 = vld [vmem:[#allocation10 + $0x10] sm:$0xff] }
 0x520   : > { %v1291_v48 = vpop.xlane.xlu0 %1290 }
 0x521   : > { %v1295_v49 = vadd.f32 1e-06, %v1291_v48  ;;  %v1518_v50 = vpop.xlane.xlu1 %1517  ;;  %v1375_v48 = vpop.f32.mrf.mxu3 }
 0x522   : > { %v1915_v51 = vpop.eup %1914  ;;  %v1520_v27 = vadd.f32 1e-06, %v1518_v50 }
 0x523   : > { %v1410_v53 = vmul.f32 %v1915_v51, %v1407_v19  ;;  %1916 = vrcp.f32 %v1295_v49  ;;  %vm1415_vm0 = vweird.f32 %v1915_v51  ;;  %v1308_v11 = vand.u32 2147483648, %v1295_v49 }
 0x524   : > { %1918 = vrcp.f32 %v1520_v27  ;;  %vm1416_vm2 = vmor %vm1414_vm1, %vm1415_vm0  ;;  %v1306_v14 = vand.u32 2147483647, %v1295_v49  ;;  %v1546_v15 = vand.u32 2147483648, %v1520_v27  ;;  %v1544_v17 = vand.u32 2147483647, %v1520_v27 }
 0x525   : > { %v1411_v13 = vsub.f32 1.0, %v1410_v53  ;;  %vm1302_vm6 = vweird.f32 %v1295_v49  ;;  %v1309_v21 = vor.u32 1.1754944e-38, %v1308_v11  ;;  %vm1540_vm10 = vweird.f32 %v1520_v27 }
 0x526   : > { %vm1307_vm11 = vcmp.eq.f32.partialorder %v1306_v14, 8.507059e+37  ;;  %v1547_v26 = vor.u32 1.1754944e-38, %v1546_v15  ;;  %vm1545_vm13 = vcmp.eq.f32.partialorder %v1544_v17, 8.507059e+37 }
 0x527   : > { %v1412_v55 = vmul.f32 %v1915_v51, %v1411_v13  ;;  %v1586_v13 = vld [vmem:[#allocation10 + $0x18] sm:$0xff] }
 0x528   : > { %v1406_v57 = vpop.xlane.xlu0 %1405  ;;  %v1294_v58 = vpop.xlane.xlu2 %1293  ;;  %1609 = vmatpush.msrb.mxu3 %v1586_v13 }
 0x529   : > { %v1917_v59 = vpop.eup %1916  ;;  %v2422_v60 = vadd.f32 1e-06, %v1406_v57  ;;  %v2424_v61 = vadd.f32 1e-06, %v1294_v58  ;;  %v1413_v62 = vadd.f32 %v1915_v51, %v1412_v55  ;;  %v1584_v55 = vld [vmem:[#allocation10 + $0x8] sm:$0xff] }
 0x52a   : > { %v1919_v63 = vpop.eup %1918  ;;  %v1298_v3 = vmul.f32 %v1917_v59, %v1295_v49  ;;  %vm1303_vm4 = vweird.f32 %v1917_v59  ;;  %1610 = vmatpush.msrb.mxu3 %v1585_v54 }
 0x52b   : > { %v1536_v5 = vmul.f32 %v1919_v63, %v1520_v27  ;;  %1920 = vrcp.f32 %v2422_v60  ;;  %v1417_v6 = vsel %vm1416_vm2, %v1915_v51, %v1413_v62  ;;  %vm1541_vm5 = vweird.f32 %v1919_v63  ;;  %vm1304_vm7 = vmor %vm1302_vm6, %vm1303_vm4 }
 0x52c   : > { %v1299_v7 = vsub.f32 1.0, %v1298_v3  ;;  %1922 = vrcp.f32 %v2424_v61  ;;  %v1422_v8 = vsel %vm1419_vm3, %v1421_v4, %v1417_v6  ;;  %vm1542_vm12 = vmor %vm1540_vm10, %vm1541_vm5  ;;  %v1434_v40 = vand.u32 2147483648, %v2422_v60  ;;  %1611 = vmatpush.msrb.mxu3 %v1584_v55 }
 0x52d   : > { %v1537_v9 = vsub.f32 1.0, %v1536_v5  ;;  %v1437_v10 = vmul.f32 %v1422_v8, %v1351_v2  ;;  %v1432_v0 = vand.u32 2147483647, %v2422_v60  ;;  %v1322_v42 = vand.u32 2147483648, %v2424_v61 }
 0x52e   : > { %v1300_v12 = vmul.f32 %v1917_v59, %v1299_v7  ;;  %v1320_v43 = vand.u32 2147483647, %v2424_v61  ;;  %vm1428_vm0 = vweird.f32 %v2422_v60  ;;  %v1435_v45 = vor.u32 1.1754944e-38, %v1434_v40 }
 0x52f   : > { %1561 = vrot.lane.b32.xlu2 %v1437_v10, %s2133_s12  ;;  %v1538_v16 = vmul.f32 %v1919_v63, %v1537_v9  ;;  %vm1316_vm2 = vweird.f32 %v2424_v61  ;;  %vm1433_vm3 = vcmp.eq.f32.partialorder %v1432_v0, 8.507059e+37  ;;  %v1323_v19 = vor.u32 1.1754944e-38, %v1322_v42 }
 0x530   : > { %v1301_v18 = vadd.f32 %v1917_v59, %v1300_v12  ;;  %vm1321_vm5 = vcmp.eq.f32.partialorder %v1320_v43, 8.507059e+37  ;;  %v1179_v56 = vpop.xlane.xlu2 %1178  ;;  %v1182_v58 = vpop.xlane.xlu0 %1181 }
 0x531   : > { %v1921_v20 = vpop.eup %1920  ;;  %v1539_v22 = vadd.f32 %v1919_v63, %v1538_v16  ;;  %v1183_v57 = vadd.f32 1e-06, %v1179_v56 }
 0x532   : > { %v1923_v23 = vpop.eup %1922  ;;  %v1424_v24 = vmul.f32 %v1921_v20, %v2422_v60  ;;  %v1305_v25 = vsel %vm1304_vm7, %v1917_v59, %v1301_v18  ;;  %vm1429_vm14 = vweird.f32 %v1921_v20  ;;  %v1583_v59 = vld [vmem:[#allocation10] sm:$0xff]  ;;  %v1184_v60 = vadd.f32 1e-06, %v1182_v58 }
 0x533   : > { %v1312_v29 = vmul.f32 %v1923_v23, %v2424_v61  ;;  %v1310_v30 = vsel %vm1307_vm11, %v1309_v21, %v1305_v25  ;;  %v1543_v31 = vsel %vm1542_vm12, %v1919_v63, %v1539_v22  ;;  %vm1317_vm15 = vweird.f32 %v1923_v23  ;;  %vm1430_vm1 = vmor %vm1428_vm0, %vm1429_vm14  ;;  %1612 = vmatpush.msrb.mxu3 %v1583_v59 }
 0x534   : > { %v1425_v33 = vsub.f32 1.0, %v1424_v24  ;;  %v1325_v35 = vmul.f32 %v1310_v30, %v1239_v28  ;;  %v1548_v36 = vsel %vm1545_vm13, %v1547_v26, %v1543_v31  ;;  %vm1318_vm4 = vmor %vm1316_vm2, %vm1317_vm15  ;;  %1924 = vrcp.f32 %v1183_v57 }
 0x535   : > { %v1313_v38 = vsub.f32 1.0, %v1312_v29  ;;  %v1550_v39 = vmul.f32 %v1548_v36, %v1487_v32  ;;  %1926 = vrcp.f32 %v1184_v60  ;;  %v1196_v6 = vand.u32 2147483648, %v1183_v57 }
 0x536   : > { %1553 = vrot.lane.b32.xlu1 %v1325_v35, %s2135_s18  ;;  %v1426_v41 = vmul.f32 %v1921_v20, %v1425_v33  ;;  %vm1190_vm7 = vweird.f32 %v1183_v57  ;;  %v1194_v7 = vand.u32 2147483647, %v1183_v57  ;;  %vm1577_vm13 = vcmask 130048   ;;  %v1907_v35 = vld [vmem:[%s2480_s6] ss:$0 sm:$0xff] }
 0x537   : > { %1571 = vrot.lane.b32.xlu2 %v1550_v39, %s2134_s17  ;;  %v1314_v1 = vmul.f32 %v1923_v23, %v1313_v38  ;;  %v1197_v10 = vor.u32 1.1754944e-38, %v1196_v6  ;;  %v1210_v15 = vand.u32 2147483648, %v1184_v60  ;;  %vm1580_vm14 = vcmask 195584  }
 0x538   : > { %v1427_v44 = vadd.f32 %v1921_v20, %v1426_v41  ;;  %vm1195_vm11 = vcmp.eq.f32.partialorder %v1194_v7, 8.507059e+37  ;;  %vm1204_vm15 = vweird.f32 %v1184_v60  ;;  %v1208_v18 = vand.u32 2147483647, %v1184_v60 }
 0x539   : > { %v1315_v46 = vadd.f32 %v1923_v23, %v1314_v1  ;;  %v1211_v25 = vor.u32 1.1754944e-38, %v1210_v15 }
 0x53a   : > { %v1431_v47 = vsel %vm1430_vm1, %v1921_v20, %v1427_v44  ;;  %v1925_v61 = vpop.eup %1924  ;;  %vm1209_vm1 = vcmp.eq.f32.partialorder %v1208_v18, 8.507059e+37 }
 0x53b   : > { %v1436_v49 = vsel %vm1433_vm3, %v1435_v45, %v1431_v47  ;;  %v1319_v50 = vsel %vm1318_vm4, %v1923_v23, %v1315_v46  ;;  %v1927_v63 = vpop.eup %1926  ;;  %vm1191_vm6 = vweird.f32 %v1925_v61 }
 0x53c   : > { %v1438_v51 = vmul.f32 %v1436_v49, %v1375_v48  ;;  %v1324_v27 = vsel %vm1321_vm5, %v1323_v19, %v1319_v50  ;;  %v1200_v3 = vmul.f32 %v1927_v63, %v1184_v60  ;;  %vm1192_vm10 = vmor %vm1190_vm7, %vm1191_vm6  ;;  %vm1205_vm12 = vweird.f32 %v1927_v63 }
 0x53d   : > { %v1326_v53 = vmul.f32 %v1324_v27, %v2417_v37  ;;  %v1186_v37 = vmul.f32 %v1925_v61, %v1183_v57  ;;  %vm1206_vm0 = vmor %vm1204_vm15, %vm1205_vm12 }
 0x53e   : > { %1563 = vrot.lane.b32.xlu0 %v1438_v51, %s2133_s12  ;;  %v1201_v5 = vsub.f32 1.0, %v1200_v3 }
 0x53f   : > { %1555 = vrot.lane.b32.xlu1 %v1326_v53, %s2135_s18  ;;  %v1187_v62 = vsub.f32 1.0, %v1186_v37 }
 0x540   : > { %v1202_v9 = vmul.f32 %v1927_v63, %v1201_v5 }
 0x541   : > { %v1188_v2 = vmul.f32 %v1925_v61, %v1187_v62 }
 0x542   : > { %v1203_v12 = vadd.f32 %v1927_v63, %v1202_v9 }
 0x543   : > { %v1189_v4 = vadd.f32 %v1925_v61, %v1188_v2 }
 0x544   : > { %v1207_v23 = vsel %vm1206_vm0, %v1927_v63, %v1203_v12 }
 0x545   : > { %v1193_v8 = vsel %vm1192_vm10, %v1925_v61, %v1189_v4 }
 0x546   : > { %v1198_v11 = vsel %vm1195_vm11, %v1197_v10, %v1193_v8 }
 0x547   : > { %v1213_v14 = vmul.f32 %v1198_v11, %v2415_v34  ;;  %v1212_v34 = vsel %vm1209_vm1, %v1211_v25, %v1207_v23 }
 0x548   : > { %v1214_v28 = vmul.f32 %v1212_v34, %v2420_v52 }
 0x578   : > { %v1570_v16 = vpop.permute.xlu0 %1569 }
 0x589   : > { %v1562_v20 = vpop.permute.xlu2 %1561 }
 0x591   : > { %v1572_v31 = vpop.permute.xlu2 %1571 }
 0x5a8   : > { %v1554_v17 = vpop.permute.xlu1 %1553 }
 0x5a9   : > { %v1575_v21 = vsel %vm1120_vm9, %v1213_v14, %v1554_v17 }
 0x5aa   : > { %v1578_v22 = vsel %vm1577_vm13, %v1575_v21, %v1562_v20 }
 0x5ab   : > { %v1581_v24 = vsel %vm1580_vm14, %v1578_v22, %v1570_v16 }
 0x5ac   : > { %1782 = vmatmul.msk.f32.vlgmr.msrb.gmra.mxu3 %vm1076_vm8, %v1581_v24 }
 0x5b0   : > { %v1564_v26 = vpop.permute.xlu0 %1563 }
 0x5b1   : > { %v1556_v29 = vpop.permute.xlu1 %1555 }
 0x5b2   : > { %v1576_v30 = vsel %vm1120_vm9, %v1214_v28, %v1556_v29 }
 0x5b3   : > { %v1579_v32 = vsel %vm1577_vm13, %v1576_v30, %v1564_v26 }
 0x5b4   : > { %v1582_v33 = vsel %vm1580_vm14, %v1579_v32, %v1572_v31 }
 0x5b5   : > { %1783 = vmatmul.msk.f32.gmra.mxu3 %vm1076_vm8, %v1582_v33 }
 0x62f   : > { %v1614_v36 = vpop.f32.mrf.mxu3 }
 0x630   : > { %v1615_v38 = vadd.f32 %v1907_v35, %v1614_v36 }
 0x632   : > { %1620 = vst.msk [vmem:[#allocation12] sm:$0xff] %vm1076_vm8, %v1615_v38 }
 0x638   : > { %v1617_v39 = vpop.f32.mrf.mxu3 }
 0x639   : > { %v1618_v52 = vadd.f32 %v1907_v35, %v1617_v39 }
 0x63b   : > { %1621 = vst.msk [vmem:[#allocation12 + $0x8] sm:$0xff] %vm1076_vm8, %v1618_v52 }
 0x63c PF: > { %p1833_p9 = scmp.eq.s32.totalorder %s1748_s27, 1  ;;  %s1639_s15 = sshll.u32 %s2481_s7, 4  ;;  %s1640_s15 = int_to_ptr.hbm [resolvable:$true] %s1639_s15 }
 0x63d   : > { %s2136_s16 = smov [#allocation12]   ;;  %s2137_s21 = smov 128  }
 0x63e   : > { %s1637_s19 = sshll.u32 %s2136_s16, 4  ;;  %s2138_s22 = smov 8   ;;  %s1638_s19 = int_to_ptr.vmem [resolvable:$true] %s1637_s19 }
 0x63f   : > { %1805 = dma.vmem_to_hbm [thread:$0]  (%p1833_p9), %s1638_s19, 256, %s1640_s15, [#allocation6], %s2137_s21, %s2137_s21, %s2138_s22  }
 0x640 PF: > { %p1834_p10 = scmp.ge.s32.totalorder %s2114_s26, 2  ;;  %p1835_p11 = scmp.eq.s32.totalorder %s1749_s28, 1 }
 0x642   : > { %p1822_p12 = pnand %p1835_p11, %p1834_p10 }
 0x644   : > { %p1823_p13 = pneg %p1822_p12 }
 0x646   : > { %2101 = dma.done.wait (%p1823_p13), [#allocation6], 256  }
 0x647   : > { %2103 = vsyncadd (%p1823_p13), [#allocation6], 4294967040  ;;  %s23_s26 = sadd.s32 1, %s2114_s26   ;;  %s2485_s24 = smov %s2110_s25 }
 0x648   : > { %p20_p0 = scmp.ge.s32.totalorder %s23_s26, 4   ;;  %s2486_s25 = smov %s2488_s14 }
 0x64a   :  { %22 = sbr.rel (!%p20_p0) target bundleno = 6 (0x6), region = 122 }
 0x64f   :  { %1661 = vsyncpa [#allocation5], 1 }
 0x650   :  { %1663 = vsyncpa [#allocation5 + $0x1], 1 }
 0x651   :  { %1664 = vsyncpa [#allocation8], 1 }
 0x652   :  { %1665 = vsyncpa [#allocation11], 1 }
 0x653   :  { %1666 = vsyncpa [#allocation6], 1 }
 0x654   :  { %1668 = vsyncpa [#allocation6 + $0x1], 1 }

</bundles_post_ra>
